<compile_context>
chip_gen: v7x
topology: tpu7x:2x2x1
jax: 0.10.0
libtpu: 0.0.40
codegen_flags: <defaults>
</compile_context>

<pallas_src>
import functools

import jax
import jax.numpy as jnp
from jax.experimental import pallas as pl
from jax.experimental.pallas import tpu as pltpu


def _round_up(x, m):
    return (x + m - 1) // m * m


def _default_vmem_limit():
    # 48 MiB on 128-MiB-VMEM chips (v5e/v6e), ~40 MiB on v7x (64 MiB per TC).
    try:
        cap = pltpu.get_tpu_info().vmem_capacity_bytes
    except Exception:
        cap = 128 * 1024 * 1024
    return min(48 * 1024 * 1024, max(cap - 24 * 1024 * 1024, 32 * 1024 * 1024))


_VMEM_LIMIT = _default_vmem_limit()


# ----------------------------------------------------------------------------
# Pallas kernels
# ----------------------------------------------------------------------------
def _tap_conv_kernel(xw_ref, w_ref, b_ref, mask_ref, o_ref, sum_ref, sq_ref, *,
                     tap_offsets, cin, group2, act):
    """One (M-tile, N-tile) block of a tap-decomposed 3-D conv.

    xw_ref  : (win, Cin) bf16   halo window for this M tile (leading dim squeezed)
    w_ref   : (ntaps*Cin, tn) bf16
    b_ref   : (1, tn) f32
    mask_ref: (tm, 1) f32       1.0 for rows that are valid conv outputs
    o_ref   : (tm, tn) bf16     relu(conv + bias)
    sum_ref, sq_ref: (1, 1, tn) f32  masked per-channel partial sums (for BN)
    """
    tm, tn = o_ref.shape
    acc = jnp.zeros((tm, tn), jnp.float32)
    ntaps = len(tap_offsets)
    if group2:
        # Pair consecutive taps so per-matmul K = 2*Cin >= 128.
        t = 0
        while t + 1 < ntaps:
            o1, o2 = tap_offsets[t], tap_offsets[t + 1]
            lhs = jnp.concatenate(
                [xw_ref[o1:o1 + tm, :], xw_ref[o2:o2 + tm, :]], axis=1)
            acc += jnp.dot(lhs, w_ref[t * cin:(t + 2) * cin, :],
                           preferred_element_type=jnp.float32)
            t += 2
        if t < ntaps:
            o1 = tap_offsets[t]
            acc += jnp.dot(xw_ref[o1:o1 + tm, :],
                           w_ref[t * cin:(t + 1) * cin, :],
                           preferred_element_type=jnp.float32)
    else:
        for t, off in enumerate(tap_offsets):
            acc += jnp.dot(xw_ref[off:off + tm, :],
                           w_ref[t * cin:(t + 1) * cin, :],
                           preferred_element_type=jnp.float32)

    y = acc + b_ref[...]
    if act == "relu":
        y = jnp.maximum(y, 0.0)
    o_ref[...] = y.astype(o_ref.dtype)

    m = mask_ref[...]                       # (tm, 1)
    ym = y * m
    sum_ref[...] = jnp.sum(ym, axis=0, keepdims=True).reshape(1, 1, tn)
    sq_ref[...] = jnp.sum(ym * y, axis=0, keepdims=True).reshape(1, 1, tn)


def _mm_bias_act_kernel(x_ref, w_ref, b_ref, o_ref, *, act):
    """Fused matmul (single K block) + bias + activation, bf16 output."""
    y = jnp.dot(x_ref[...], w_ref[...],
                preferred_element_type=jnp.float32) + b_ref[...]
    if act in ("relu", "relu_tanh"):
        y = jnp.maximum(y, 0.0)
    if act == "relu_tanh":
        y = jnp.tanh(y)
    o_ref[...] = y.astype(o_ref.dtype)


def _bn_norm_kernel(x_ref, scale_ref, shift_ref, o_ref):
    y = x_ref[...].astype(jnp.float32) * scale_ref[...] + shift_ref[...]
    o_ref[...] = y.astype(o_ref.dtype)


def _bn_norm_add_kernel(x_ref, scale_ref, shift_ref, r_ref, o_ref):
    y = (x_ref[...].astype(jnp.float32) * scale_ref[...] + shift_ref[...]
         + r_ref[...].astype(jnp.float32))
    o_ref[...] = y.astype(o_ref.dtype)


# ----------------------------------------------------------------------------
# Pallas wrappers
# ----------------------------------------------------------------------------
@functools.partial(jax.jit, static_argnames=(
    "tap_offsets", "tm", "n_chunks", "tn", "cin", "group2", "act"))
def _tap_conv_pallas(xw, w, b, mask, *, tap_offsets, tm, n_chunks, tn, cin,
                     group2, act):
    """xw: [n_chunks, win, Cin] bf16 halo windows; w: [ntaps*Cin, Nout] bf16;
    b: [Nout] f32; mask: [n_chunks*tm, 1] f32.
    Returns (bf16 [n_chunks*tm, Nout], sum [Nout] f32, sumsq [Nout] f32)."""
    _, win, _ = xw.shape
    K, Nout = w.shape
    assert K == len(tap_offsets) * cin
    assert Nout % tn == 0
    Mp = n_chunks * tm
    nN = Nout // tn

    kernel = functools.partial(_tap_conv_kernel, tap_offsets=tap_offsets,
                               cin=cin, group2=group2, act=act)
    out, s, sq = pl.pallas_call(
        kernel,
        out_shape=(jax.ShapeDtypeStruct((Mp, Nout), jnp.bfloat16),
                   jax.ShapeDtypeStruct((n_chunks, 1, Nout), jnp.float32),
                   jax.ShapeDtypeStruct((n_chunks, 1, Nout), jnp.float32)),
        grid_spec=pltpu.PrefetchScalarGridSpec(
            num_scalar_prefetch=0,
            # M is the inner axis so the (possibly multi-MB) weight block is
            # fetched once per N tile and the small halo window streams.
            grid=(nN, n_chunks),
            in_specs=[
                pl.BlockSpec((None, win, cin), lambda j, i: (i, 0, 0)),
                pl.BlockSpec((K, tn), lambda j, i: (0, j)),
                pl.BlockSpec((1, tn), lambda j, i: (0, j)),
                pl.BlockSpec((tm, 1), lambda j, i: (i, 0)),
            ],
            out_specs=(pl.BlockSpec((tm, tn), lambda j, i: (i, j)),
                       pl.BlockSpec((1, 1, tn), lambda j, i: (i, 0, j)),
                       pl.BlockSpec((1, 1, tn), lambda j, i: (i, 0, j))),
        ),
        compiler_params=pltpu.CompilerParams(
            dimension_semantics=("parallel", "parallel"),
            vmem_limit_bytes=_VMEM_LIMIT),
    )(xw, w, b.astype(jnp.float32).reshape(1, Nout), mask)
    return out, jnp.sum(s, axis=(0, 1)), jnp.sum(sq, axis=(0, 1))


@functools.partial(jax.jit, static_argnames=("act",))
def matmul_bias_act(x, w, b, act):
    """Small-K fused matmul (Cin=1 first conv and the 1x1x1 head), bf16 out."""
    M, K = x.shape
    _, N = w.shape
    TM = min(2048, _round_up(M, 8))
    Mp, Kp, Np = _round_up(M, TM), _round_up(K, 128), _round_up(N, 128)

    xp = x.astype(jnp.bfloat16)
    if (Mp, Kp) != (M, K):
        xp = jnp.pad(xp, ((0, Mp - M), (0, Kp - K)))
    wp = w.astype(jnp.bfloat16)
    if (Kp, Np) != (K, N):
        wp = jnp.pad(wp, ((0, Kp - K), (0, Np - N)))
    bp = b.astype(jnp.float32)
    if Np != N:
        bp = jnp.pad(bp, (0, Np - N))
    bp = bp.reshape(1, Np)

    out = pl.pallas_call(
        functools.partial(_mm_bias_act_kernel, act=act),
        out_shape=jax.ShapeDtypeStruct((Mp, Np), jnp.bfloat16),
        grid_spec=pltpu.PrefetchScalarGridSpec(
            num_scalar_prefetch=0,
            grid=(Mp // TM,),
            in_specs=[pl.BlockSpec((TM, Kp), lambda i: (i, 0)),
                      pl.BlockSpec((Kp, Np), lambda i: (0, 0)),
                      pl.BlockSpec((1, Np), lambda i: (0, 0))],
            out_specs=pl.BlockSpec((TM, Np), lambda i: (i, 0)),
        ),
        compiler_params=pltpu.CompilerParams(
            dimension_semantics=("parallel",),
            vmem_limit_bytes=_VMEM_LIMIT),
    )(xp, wp, bp)
    return out[:M, :N]


def _bn_pallas(xf, scale, shift, res):
    """Normalize (and optionally add a residual), bf16 in / bf16 out."""
    M, C = xf.shape
    TM = min(2048, _round_up(M, 8))
    Mp = _round_up(M, TM)
    if Mp != M:
        xf = jnp.pad(xf, ((0, Mp - M), (0, 0)))
        if res is not None:
            res = jnp.pad(res, ((0, Mp - M), (0, 0)))
    scale2 = scale.reshape(1, C).astype(jnp.float32)
    shift2 = shift.reshape(1, C).astype(jnp.float32)
    cp = pltpu.CompilerParams(dimension_semantics=("parallel",),
                              vmem_limit_bytes=_VMEM_LIMIT)
    out_shape = jax.ShapeDtypeStruct((Mp, C), jnp.bfloat16)
    if res is None:
        out = pl.pallas_call(
            _bn_norm_kernel,
            out_shape=out_shape,
            grid_spec=pltpu.PrefetchScalarGridSpec(
                num_scalar_prefetch=0, grid=(Mp // TM,),
                in_specs=[pl.BlockSpec((TM, C), lambda i: (i, 0)),
                          pl.BlockSpec((1, C), lambda i: (0, 0)),
                          pl.BlockSpec((1, C), lambda i: (0, 0))],
                out_specs=pl.BlockSpec((TM, C), lambda i: (i, 0))),
            compiler_params=cp,
        )(xf, scale2, shift2)
    else:
        out = pl.pallas_call(
            _bn_norm_add_kernel,
            out_shape=out_shape,
            grid_spec=pltpu.PrefetchScalarGridSpec(
                num_scalar_prefetch=0, grid=(Mp // TM,),
                in_specs=[pl.BlockSpec((TM, C), lambda i: (i, 0)),
                          pl.BlockSpec((1, C), lambda i: (0, 0)),
                          pl.BlockSpec((1, C), lambda i: (0, 0)),
                          pl.BlockSpec((TM, C), lambda i: (i, 0))],
                out_specs=pl.BlockSpec((TM, C), lambda i: (i, 0))),
            compiler_params=cp,
        )(xf, scale2, shift2, res)
    return out[:M]


# ----------------------------------------------------------------------------
# Layer helpers (thin XLA glue around the Pallas kernels)
# ----------------------------------------------------------------------------
def _tile_m(R):
    if R <= 256:
        return _round_up(R, 8), 1
    tm = min(2048, _round_up(pl.cdiv(R, 2), 8))
    return tm, pl.cdiv(R, tm)


def _choose_tn(K, Nout):
    # tn=256 keeps the v6e/v7x MXU N-width full; cap single weight block to
    # ~8 MiB so double-buffering stays well inside VMEM.  (v5e prefers 128.)
    for tn in (256, 128):
        if Nout % tn == 0 and K * tn * 2 <= 8 * 1024 * 1024:
            return tn
    return min(Nout, 128)


def _valid_mask(N_, D, H, W, Dp, Hp, Wp, Mp):
    r = jnp.arange(Mp, dtype=jnp.int32)
    xx = r % Wp
    yy = (r // Wp) % Hp
    zz = (r // (Wp * Hp)) % Dp
    ok = (r < N_ * Dp * Hp * Wp) & (xx < W) & (yy < H) & (zz < D)
    return ok.astype(jnp.float32).reshape(Mp, 1)


def _tap_conv_padded(xp, taps, w_mat, bias, D, H, W):
    """Run a tap-decomposed conv on a spatially padded NDHWC input.

    Returns (valid conv output bf16 [N,D,H,W,Nout], masked sum / sumsq [Nout]).
    """
    N_, Dp, Hp, Wp, Cin = xp.shape
    Nout = w_mat.shape[1]
    R = N_ * Dp * Hp * Wp
    halo = max(taps)
    tm, n_chunks = _tile_m(R)
    win = tm + halo
    need = (n_chunks - 1) * tm + win

    xf = xp.reshape(R, Cin)
    if need > R:
        xf = jnp.pad(xf, ((0, need - R), (0, 0)))
    # M-tiled halo windows (auto double-buffered by BlockSpec in the kernel).
    xw = jnp.stack([xf[i * tm:i * tm + win] for i in range(n_chunks)], axis=0)
    mask = _valid_mask(N_, D, H, W, Dp, Hp, Wp, n_chunks * tm)
    tn = _choose_tn(w_mat.shape[0], Nout)

    out, s, sq = _tap_conv_pallas(
        xw, w_mat, bias, mask, tap_offsets=taps, tm=tm, n_chunks=n_chunks,
        tn=tn, cin=Cin, group2=(Cin < 128), act="relu")
    out = out[:R].reshape(N_, Dp, Hp, Wp, Nout)[:, :D, :H, :W, :]
    return out, s, sq


def conv3d_3x3(x, w_mat, bias):
    """3x3x3 conv, padding=1.  x: [N,D,H,W,Cin]; w_mat: [27*Cin, Cout] bf16."""
    x = x.astype(jnp.bfloat16)
    N_, D, H, W, _ = x.shape
    xp = jnp.pad(x, ((0, 0), (1, 1), (1, 1), (1, 1), (0, 0)))
    Dp, Hp, Wp = D + 2, H + 2, W + 2
    taps = tuple(dz * Hp * Wp + dy * Wp + dx
                 for dz in range(3) for dy in range(3) for dx in range(3))
    return _tap_conv_padded(xp, taps, w_mat, bias, D, H, W)


def conv_transpose3d_phase(x, w_merged, bias_merged):
    """ConvTranspose3d(k=3, s=2, p=1, op=1) via merged stride-phase matmul."""
    x = x.astype(jnp.bfloat16)
    N_, D, H, W, C = x.shape
    xp = jnp.pad(x, ((0, 0), (0, 1), (0, 1), (0, 1), (0, 0)))
    Dp, Hp, Wp = D + 1, H + 1, W + 1
    taps = tuple(dz * Hp * Wp + dy * Wp + dx
                 for dz in range(2) for dy in range(2) for dx in range(2))
    out, s8, sq8 = _tap_conv_padded(xp, taps, w_merged, bias_merged, D, H, W)
    # Phase-unshuffle (on bf16 data), columns are ordered (pd, ph, pw, c).
    out = out.reshape(N_, D, H, W, 2, 2, 2, C)
    out = jnp.transpose(out, (0, 1, 4, 2, 5, 3, 6, 7))
    out = out.reshape(N_, 2 * D, 2 * H, 2 * W, C)
    return out, s8.reshape(8, C).sum(axis=0), sq8.reshape(8, C).sum(axis=0)


def conv3d_first(x, w_mat, bias):
    """conv1_1 (Cin=1): tiny im2col ([M,27] bf16) + fused matmul kernel."""
    N_, D, H, W, _ = x.shape
    xp = jnp.pad(x.astype(jnp.bfloat16), ((0, 0), (1, 1), (1, 1), (1, 1), (0, 0)))
    cols = [xp[:, dz:dz + D, dy:dy + H, dx:dx + W, 0]
            for dz in range(3) for dy in range(3) for dx in range(3)]
    patches = jnp.stack(cols, axis=-1).reshape(N_ * D * H * W, 27)
    y = matmul_bias_act(patches, w_mat, bias, "relu")
    return y.reshape(N_, D, H, W, -1)


def conv3d_1x1(x, w_mat, bias, act):
    N_, D, H, W, Cin = x.shape
    y = matmul_bias_act(x.reshape(-1, Cin), w_mat, bias, act)
    return y.reshape(N_, D, H, W, -1)


def maxpool3d(x):
    N_, D, H, W, C = x.shape
    x = x.reshape(N_, D // 2, 2, H // 2, 2, W // 2, 2, C)
    return x.max(axis=(2, 4, 6))


def _bn_apply(y, s, sq, count, gamma, beta, residual=None):
    """Training-mode BatchNorm3d (biased batch var, eps=1e-5), bf16 output.

    Statistics (sum / sum-of-squares over valid elements) are precomputed
    (fused into the conv epilogue); this only normalizes and optionally adds
    the skip-connection residual.
    """
    mean = s / count
    var = jnp.maximum(sq / count - mean * mean, 0.0)
    scale = gamma * jax.lax.rsqrt(var + 1e-5)
    shift = beta - mean * scale

    shp = y.shape
    C = shp[-1]
    M = y.size // C
    yf = y.reshape(M, C).astype(jnp.bfloat16)
    rf = (residual.reshape(M, C).astype(jnp.bfloat16)
          if residual is not None else None)
    # Lane-densify the 64-channel level: view (M, 64) as (M/2, 128).
    if C < 128 and 128 % C == 0 and M % (128 // C) == 0:
        f = 128 // C
        yf = yf.reshape(M // f, C * f)
        rf = rf.reshape(M // f, C * f) if rf is not None else None
        scale = jnp.tile(scale, f)
        shift = jnp.tile(shift, f)
    out = _bn_pallas(yf, scale, shift, rf)
    return out.reshape(shp)


# ----------------------------------------------------------------------------
# Parameters (PyTorch layouts) + packing into MXU-ready bf16 matrices
# ----------------------------------------------------------------------------
CONV_SPECS = {
    "conv1_1": (64, 1, 3),   "conv1_2": (64, 64, 3),
    "conv2_1": (64, 64, 3),  "conv2_2": (128, 64, 3),  "conv2_3": (128, 128, 3),
    "conv3_1": (128, 128, 3), "conv3_2": (256, 128, 3), "conv3_3": (256, 256, 3),
    "conv4_1": (256, 256, 3), "conv4_2": (512, 256, 3), "conv4_3": (512, 512, 3),
    "conv5_1": (512, 512, 3), "conv5_2": (1024, 512, 3), "conv5_3": (512, 1024, 3),
    "conv6_2": (512, 512, 3), "conv6_3": (512, 512, 3),  "conv6_4": (256, 512, 3),
    "conv7_2": (256, 256, 3), "conv7_3": (256, 256, 3),  "conv7_4": (128, 256, 3),
    "conv8_2": (128, 128, 3), "conv8_3": (128, 128, 3),  "conv8_4": (64, 128, 3),
    "conv9_2": (64, 64, 3),  "conv9_3": (64, 64, 3),    "conv9_4": (1, 64, 1),
}
DECONV_SPECS = {"deconv6_1": 512, "deconv7_1": 256, "deconv8_1": 128, "deconv9_1": 64}
BN_SPECS = {"bn1": 64, "bn2": 128, "bn3": 256, "bn4": 512, "bn5": 1024}


def init_params(key):
    params = {}
    for name, (cout, cin, k) in CONV_SPECS.items():
        key, k1, k2 = jax.random.split(key, 3)
        fan_in = cin * k ** 3
        params[name + "_w"] = (jax.random.normal(k1, (cout, cin, k, k, k),
                                                 jnp.float32) / jnp.sqrt(fan_in))
        bound = 1.0 / jnp.sqrt(fan_in)
        params[name + "_b"] = jax.random.uniform(k2, (cout,), jnp.float32,
                                                 -bound, bound)
    for name, c in DECONV_SPECS.items():
        key, k1, k2 = jax.random.split(key, 3)
        fan_in = c * 27
        # ConvTranspose3d weight layout: [Cin, Cout, k, k, k]
        params[name + "_w"] = (jax.random.normal(k1, (c, c, 3, 3, 3),
                                                 jnp.float32) / jnp.sqrt(fan_in))
        bound = 1.0 / jnp.sqrt(fan_in)
        params[name + "_b"] = jax.random.uniform(k2, (c,), jnp.float32,
                                                 -bound, bound)
    for name, c in BN_SPECS.items():
        params[name + "_g"] = jnp.ones((c,), jnp.float32)
        params[name + "_b"] = jnp.zeros((c,), jnp.float32)
    return params


def _pack_conv_weight(w):       # [Cout, Cin, k,k,k] -> [k^3*Cin, Cout]
    cout, cin, k = w.shape[0], w.shape[1], w.shape[2]
    return jnp.transpose(w, (2, 3, 4, 1, 0)).reshape(k ** 3 * cin, cout)


def _pack_deconv_weight(w):     # [Cin, Cout, 3,3,3] -> merged [8*Cin, 8*Cout]
    cin, cout = w.shape[0], w.shape[1]
    tap_blocks = []
    for od in (0, 1):           # tap (input offset) bits, rows
        for oh in (0, 1):
            for ow in (0, 1):
                row = []
                for pd in (0, 1):   # output phase bits, columns
                    for ph in (0, 1):
                        for pw in (0, 1):
                            ks, ok = [], True
                            for p_bit, o_bit in ((pd, od), (ph, oh), (pw, ow)):
                                if p_bit == 0 and o_bit == 0:
                                    ks.append(1)
                                elif p_bit == 1 and o_bit == 0:
                                    ks.append(2)
                                elif p_bit == 1 and o_bit == 1:
                                    ks.append(0)
                                else:       # phase 0 never uses offset 1
                                    ok = False
                            blk = (w[:, :, ks[0], ks[1], ks[2]] if ok
                                   else jnp.zeros((cin, cout), w.dtype))
                            row.append(blk)
                tap_blocks.append(jnp.concatenate(row, axis=1))
    return jnp.concatenate(tap_blocks, axis=0)


def pack_params(params):
    pp = {}
    for name in CONV_SPECS:
        pp[name + "_w"] = _pack_conv_weight(params[name + "_w"]).astype(jnp.bfloat16)
        pp[name + "_b"] = params[name + "_b"].astype(jnp.float32)
    for name in DECONV_SPECS:
        pp[name + "_w"] = _pack_deconv_weight(params[name + "_w"]).astype(jnp.bfloat16)
        pp[name + "_b"] = jnp.tile(params[name + "_b"], 8).astype(jnp.float32)
    for name in BN_SPECS:
        pp[name + "_g"] = params[name + "_g"]
        pp[name + "_b"] = params[name + "_b"]
    return pp


# ----------------------------------------------------------------------------
# Forward pass (mirrors UNET_3D.forward exactly)
# ----------------------------------------------------------------------------
def unet3d_forward(pp, x_ncdhw):
    x = jnp.transpose(x_ncdhw, (0, 2, 3, 4, 1)).astype(jnp.float32)   # -> NDHWC

    def cbr(h, conv, bn):                  # bn(relu(conv(h))), stats fused in conv
        y, s, sq = conv3d_3x3(h, pp[conv + "_w"], pp[conv + "_b"])
        cnt = y.shape[0] * y.shape[1] * y.shape[2] * y.shape[3]
        return _bn_apply(y, s, sq, cnt, pp[bn + "_g"], pp[bn + "_b"])

    def dbr(h, deconv, bn, skip):          # bn(relu(deconv(h))) + skip (fused add)
        y, s, sq = conv_transpose3d_phase(h, pp[deconv + "_w"], pp[deconv + "_b"])
        cnt = y.shape[0] * y.shape[1] * y.shape[2] * y.shape[3]
        return _bn_apply(y, s, sq, cnt, pp[bn + "_g"], pp[bn + "_b"],
                         residual=skip)

    # conv1_1 (Cin=1) -> BN stats via a cheap XLA reduction over the bf16 output
    h = conv3d_first(x, pp["conv1_1_w"], pp["conv1_1_b"])
    hf = h.astype(jnp.float32)
    s = jnp.sum(hf, axis=(0, 1, 2, 3))
    sq = jnp.sum(hf * hf, axis=(0, 1, 2, 3))
    cnt = h.shape[0] * h.shape[1] * h.shape[2] * h.shape[3]
    y = _bn_apply(h, s, sq, cnt, pp["bn1_g"], pp["bn1_b"])

    y1 = cbr(y, "conv1_2", "bn1")
    y = maxpool3d(y1)
    y = cbr(y, "conv2_1", "bn1")
    y = cbr(y, "conv2_2", "bn2")
    y2 = cbr(y, "conv2_3", "bn2")
    y = maxpool3d(y2)
    y = cbr(y, "conv3_1", "bn2")
    y = cbr(y, "conv3_2", "bn3")
    y3 = cbr(y, "conv3_3", "bn3")
    y = maxpool3d(y3)
    y = cbr(y, "conv4_1", "bn3")
    y = cbr(y, "conv4_2", "bn4")
    y4 = cbr(y, "conv4_3", "bn4")
    y = maxpool3d(y4)
    y = cbr(y, "conv5_1", "bn4")
    y = cbr(y, "conv5_2", "bn5")
    y = cbr(y, "conv5_3", "bn4")
    y = dbr(y, "deconv6_1", "bn4", y4)
    y = cbr(y, "conv6_2", "bn4")
    y = cbr(y, "conv6_3", "bn4")
    y = cbr(y, "conv6_4", "bn3")
    y = dbr(y, "deconv7_1", "bn3", y3)
    y = cbr(y, "conv7_2", "bn3")
    y = cbr(y, "conv7_3", "bn3")
    y = cbr(y, "conv7_4", "bn2")
    y = dbr(y, "deconv8_1", "bn2", y2)
    y = cbr(y, "conv8_2", "bn2")
    y = cbr(y, "conv8_3", "bn2")
    y = cbr(y, "conv8_4", "bn1")
    y = dbr(y, "deconv9_1", "bn1", y1)
    y = cbr(y, "conv9_2", "bn1")
    y = cbr(y, "conv9_3", "bn1")
    # conv9_4 is 1x1x1; tanh(relu(.)) fused into the Pallas matmul epilogue.
    y = conv3d_1x1(y, pp["conv9_4_w"], pp["conv9_4_b"], "relu_tanh")
    return jnp.transpose(y.astype(jnp.float32), (0, 4, 1, 2, 3))       # -> NCDHW


# ----------------------------------------------------------------------------
if __name__ == "__main__":
    key = jax.random.PRNGKey(0)
    pkey, xkey = jax.random.split(key)
    params = init_params(pkey)
    packed = pack_params(params)      # weight transposition / bf16 cast done once

    # Input must be divisible by 2^4 spatially (4 maxpools). batch=2, 1 channel, 16^3.
    x = jax.random.normal(xkey, (2, 1, 16, 16, 16), jnp.float32)

    fwd = jax.jit(unet3d_forward)
    out = fwd(packed, x)
    out = jax.block_until_ready(out)
    assert out.shape == (2, 1, 16, 16, 16), out.shape
    assert bool(jnp.all(jnp.isfinite(out)))
    print("KERNEL_OK")
</pallas_src>

<mosaic_0001>
module attributes {stable_mosaic.version = 11 : i64} {
  func.func @_mm_bias_act_kernel(%arg0: i32, %arg1: memref<2048x128xbf16, #tpu.memory_space<vmem>>, %arg2: memref<128x128xbf16, #tpu.memory_space<vmem>>, %arg3: memref<1x128xf32, #tpu.memory_space<vmem>>, %arg4: memref<2048x128xbf16, #tpu.memory_space<vmem>>) attributes {dimension_semantics = [#tpu.dimension_semantics<parallel>], iteration_bounds = array<i64: 4>, scalar_prefetch = 0 : i64, scratch_operands = 0 : i64, tpu.core_type = #tpu.core_type<tc>, window_params = [{transform_indices = @transform_0, window_bounds = array<i64: 2048, 128>}, {pipeline_mode = #tpu.pipeline_mode<synchronous>, transform_indices = @transform_1, window_bounds = array<i64: 128, 128>}, {pipeline_mode = #tpu.pipeline_mode<synchronous>, transform_indices = @transform_2, window_bounds = array<i64: 1, 128>}, {transform_indices = @transform_3, window_bounds = array<i64: 2048, 128>}]} {
    %c0 = arith.constant 0 : index
    %c0_0 = arith.constant 0 : index
    %0 = vector.load %arg1[%c0, %c0_0] : memref<2048x128xbf16, #tpu.memory_space<vmem>>, vector<2048x128xbf16>
    %c0_1 = arith.constant 0 : index
    %c0_2 = arith.constant 0 : index
    %1 = vector.load %arg2[%c0_1, %c0_2] : memref<128x128xbf16, #tpu.memory_space<vmem>>, vector<128x128xbf16>
    %cst = arith.constant dense<0.000000e+00> : vector<2048x128xf32>
    %2 = tpu.matmul %0, %1, %cst {dimension_numbers = #tpu.dot_dimension_numbers<[1], [0], [0], [1], [0, 0, 1, 1], [], []>} : vector<2048x128xbf16>, vector<128x128xbf16>, vector<2048x128xf32> -> vector<2048x128xf32>
    %c0_3 = arith.constant 0 : index
    %c0_4 = arith.constant 0 : index
    %3 = vector.load %arg3[%c0_3, %c0_4] : memref<1x128xf32, #tpu.memory_space<vmem>>, vector<1x128xf32>
    %4 = vector.broadcast %3 : vector<1x128xf32> to vector<2048x128xf32>
    %5 = arith.addf %2, %4 : vector<2048x128xf32>
    %cst_5 = arith.constant 0.000000e+00 : f32
    %6 = vector.broadcast %cst_5 : f32 to vector<2048x128xf32>
    %7 = arith.maximumf %5, %6 : vector<2048x128xf32>
    %8 = arith.truncf %7 : vector<2048x128xf32> to vector<2048x128xbf16>
    %c0_6 = arith.constant 0 : index
    %c0_7 = arith.constant 0 : index
    %9 = vector.load %arg4[%c0_6, %c0_7] : memref<2048x128xbf16, #tpu.memory_space<vmem>>, vector<2048x128xbf16>
    tpu.vector_store %arg4[%c0_6, %c0_7], %8 {strides = array<i32>} : memref<2048x128xbf16, #tpu.memory_space<vmem>>, vector<2048x128xbf16>,
    return
  }
  func.func @transform_0(%arg0: i32) -> (i32, i32) {
    %c0_i32 = arith.constant 0 : i32
    %c0_i32_0 = arith.constant 0 : i32
    return %arg0, %c0_i32 : i32, i32
  }
  func.func @transform_1(%arg0: i32) -> (i32, i32) {
    %c0_i32 = arith.constant 0 : i32
    %c0_i32_0 = arith.constant 0 : i32
    %c0_i32_1 = arith.constant 0 : i32
    return %c0_i32, %c0_i32_0 : i32, i32
  }
  func.func @transform_2(%arg0: i32) -> (i32, i32) {
    %c0_i32 = arith.constant 0 : i32
    %c0_i32_0 = arith.constant 0 : i32
    %c0_i32_1 = arith.constant 0 : i32
    return %c0_i32, %c0_i32_0 : i32, i32
  }
  func.func @transform_3(%arg0: i32) -> (i32, i32) {
    %c0_i32 = arith.constant 0 : i32
    %c0_i32_0 = arith.constant 0 : i32
    return %arg0, %c0_i32 : i32, i32
  }
}

</mosaic_0001>

<bundles_post_ra>
// kernel: matmul_bias_act.1
= control target key start
LH: loop header
LB: loop body
LE: loop exit
PB: predicated region body
PF: predicated region fallthrough
CT: control target
= control target key end

     0   :  { %s5944_s12 = smov 0   ;;  %s6513_s0 = inlined_call_operand.vmem [shape: bf16[8192,128], index: 0, kind: input, shape index: {}]   ;;  %s6514_s1 = inlined_call_operand.vmem [shape: bf16[128,128], index: 1, kind: input, shape index: {}]   ;;  %s6515_s2 = inlined_call_operand.vmem [shape: f32[1,128], index: 2, kind: input, shape index: {}]   ;;  %s6516_s3 = inlined_call_operand.vmem [shape: bf16[8192,128], index: 3, kind: output, shape index: {}]  }
   0x1 LB: > { %s3919_s13 = sadd.s32 4294967295, %s5922_s12   ;;  %p3923_p0 = scmp.ge.s32.totalorder %s5922_s12, 1  ;;  %s5922_s12 = sphi %s5944_s12, %s13_s12  }
   0x2   : > { %p138_p1 = scmp.lt.s32.totalorder %s5922_s12, 5 }
   0x4   : > { %p139_p2 = pnand %p3923_p0, %p138_p1 }
   0x5   : > { %v5778_v0 = vld [vmem:[%s6514_s1] sm:$0xff] (!%p139_p2)   ;;  %s3924_s16 = sshll.u32 (!%p139_p2), %s3919_s13, 8  ;;  %v5779_v1 = vld [vmem:[%s6514_s1 + $0x8] sm:$0xff] (!%p139_p2)   ;;  %v5780_v2 = vld [vmem:[%s6514_s1 + $0x10] sm:$0xff] (!%p139_p2)  }
   0x6   : > { %142 = sbr.rel (%p139_p2) target bundleno = 508 (0x1fc), region = 32  ;;  %p163_p3 = scmp.lt.s32.totalorder (!%p139_p2), %s3924_s16, 1023  ;;  %5482 = vmatprep.subr.bf16.mxu0 (!%p139_p2), %v5778_v0  ;;  %5754 = vmatprep.subr.bf16.mxu1 (!%p139_p2), %v5778_v0  ;;  %v5781_v3 = vld [vmem:[%s6514_s1 + $0x18] sm:$0xff] (!%p139_p2)   ;;  %v5782_v6 = vld [vmem:[%s6514_s1 + $0x20] sm:$0xff] (!%p139_p2)   ;;  %v5783_v7 = vld [vmem:[%s6514_s1 + $0x28] sm:$0xff] (!%p139_p2)  }
   0x7   : > { %5483 = vmatpush3.bf16.msra.mxu0 (!%p139_p2), %v5778_v0  ;;  %5762 = vmatpush3.bf16.msra.mxu1 (!%p139_p2), %v5778_v0  ;;  %v5784_v8 = vld [vmem:[%s6514_s1 + $0x30] sm:$0xff] (!%p139_p2)   ;;  %v5785_v9 = vld [vmem:[%s6514_s1 + $0x38] sm:$0xff] (!%p139_p2)  }
   0x8   : > { %5484 = vmatprep.subr.bf16.mxu0 (!%p139_p2), %v5779_v1  ;;  %5755 = vmatprep.subr.bf16.mxu1 (!%p139_p2), %v5779_v1 }
   0xb   : > { %5485 = vmatpush3.bf16.msra.mxu0 (!%p139_p2), %v5779_v1  ;;  %5763 = vmatpush3.bf16.msra.mxu1 (!%p139_p2), %v5779_v1 }
   0xc   : > { %5486 = vmatprep.subr.bf16.mxu0 (!%p139_p2), %v5780_v2  ;;  %5756 = vmatprep.subr.bf16.mxu1 (!%p139_p2), %v5780_v2 }
   0xd   : > { %s6518_s16 = smov (!%p163_p3, %s3924_s16), 1023 }
   0xe   : > { %s3925_s21 = sshll.u32 %s6518_s16, 2 }
   0xf   : > { %s5969_s24 = scalar_lea.vmem %s6513_s0, %s3925_s21  ;;  %5487 = vmatpush3.bf16.msra.mxu0 %v5780_v2  ;;  %5764 = vmatpush3.bf16.msra.mxu1 %v5780_v2  ;;  %s6118_s13 = scalar_lea.vmem %s6516_s3, %s3925_s21 }
  0x10   : > { %v5786_v4 = vld [vmem:[%s5969_s24] sm:$0xff]   ;;  %5488 = vmatprep.subr.bf16.mxu0 %v5781_v3  ;;  %5757 = vmatprep.subr.bf16.mxu1 %v5781_v3  ;;  %v5788_v10 = vld [vmem:[%s5969_s24 + $0x8] sm:$0xff]   ;;  %v5790_v12 = vld [vmem:[%s5969_s24 + $0x10] sm:$0xff]  }
  0x11   : > { %v5787_v5 = vld [vmem:[%s5969_s24 + $0x200] sm:$0xff]   ;;  %5498 = vmatprep.mubr.bf16.mxu0 %v5786_v4  ;;  %v5789_v11 = vld [vmem:[%s5969_s24 + $0x208] sm:$0xff]   ;;  %v5791_v13 = vld [vmem:[%s5969_s24 + $0x210] sm:$0xff]  }
  0x12   : > { %5626 = vmatprep.mubr.bf16.mxu1 %v5787_v5  ;;  %v5792_v14 = vld [vmem:[%s5969_s24 + $0x18] sm:$0xff]   ;;  %v5794_v16 = vld [vmem:[%s5969_s24 + $0x20] sm:$0xff]   ;;  %v5796_v18 = vld [vmem:[%s5969_s24 + $0x28] sm:$0xff]  }
  0x13   : > { %5489 = vmatpush3.bf16.msra.mxu0 %v5781_v3  ;;  %5765 = vmatpush3.bf16.msra.mxu1 %v5781_v3  ;;  %v5793_v15 = vld [vmem:[%s5969_s24 + $0x218] sm:$0xff]   ;;  %v5795_v17 = vld [vmem:[%s5969_s24 + $0x220] sm:$0xff]   ;;  %v5797_v19 = vld [vmem:[%s5969_s24 + $0x228] sm:$0xff]  }
  0x14   : > { %5490 = vmatprep.subr.bf16.mxu0 %v5782_v6  ;;  %5758 = vmatprep.subr.bf16.mxu1 %v5782_v6  ;;  %v5798_v20 = vld [vmem:[%s5969_s24 + $0x30] sm:$0xff]   ;;  %v5800_v22 = vld [vmem:[%s5969_s24 + $0x38] sm:$0xff]   ;;  %v5802_v24 = vld [vmem:[%s5969_s24 + $0x40] sm:$0xff]  }
  0x15   : > { %v5799_v21 = vld [vmem:[%s5969_s24 + $0x230] sm:$0xff]   ;;  %v5801_v23 = vld [vmem:[%s5969_s24 + $0x238] sm:$0xff]   ;;  %v5803_v25 = vld [vmem:[%s5969_s24 + $0x240] sm:$0xff]  }
  0x16   : > { %v5804_v26 = vld [vmem:[%s5969_s24 + $0x48] sm:$0xff]   ;;  %v5806_v28 = vld [vmem:[%s5969_s24 + $0x50] sm:$0xff]   ;;  %v5808_v30 = vld [vmem:[%s5969_s24 + $0x58] sm:$0xff]  }
  0x17   : > { %5491 = vmatpush3.bf16.msra.mxu0 %v5782_v6  ;;  %5766 = vmatpush3.bf16.msra.mxu1 %v5782_v6  ;;  %v5805_v27 = vld [vmem:[%s5969_s24 + $0x248] sm:$0xff]   ;;  %v5807_v29 = vld [vmem:[%s5969_s24 + $0x250] sm:$0xff]   ;;  %v5809_v31 = vld [vmem:[%s5969_s24 + $0x258] sm:$0xff]  }
  0x18   : > { %5492 = vmatprep.subr.bf16.mxu0 %v5783_v7  ;;  %5759 = vmatprep.subr.bf16.mxu1 %v5783_v7  ;;  %v5810_v32 = vld [vmem:[%s5969_s24 + $0x60] sm:$0xff]   ;;  %v5812_v34 = vld [vmem:[%s5969_s24 + $0x68] sm:$0xff]   ;;  %v5814_v36 = vld [vmem:[%s5969_s24 + $0x70] sm:$0xff]  }
  0x19   : > { %v5811_v33 = vld [vmem:[%s5969_s24 + $0x260] sm:$0xff]   ;;  %v5813_v35 = vld [vmem:[%s5969_s24 + $0x268] sm:$0xff]   ;;  %v5815_v37 = vld [vmem:[%s5969_s24 + $0x270] sm:$0xff]  }
  0x1a   : > { %v5816_v38 = vld [vmem:[%s5969_s24 + $0x78] sm:$0xff]   ;;  %v5818_v40 = vld [vmem:[%s5969_s24 + $0x80] sm:$0xff]   ;;  %v5820_v42 = vld [vmem:[%s5969_s24 + $0x88] sm:$0xff]  }
  0x1b   : > { %5493 = vmatpush3.bf16.msra.mxu0 %v5783_v7  ;;  %5767 = vmatpush3.bf16.msra.mxu1 %v5783_v7  ;;  %v5817_v39 = vld [vmem:[%s5969_s24 + $0x278] sm:$0xff]   ;;  %v5819_v41 = vld [vmem:[%s5969_s24 + $0x280] sm:$0xff]   ;;  %v5821_v43 = vld [vmem:[%s5969_s24 + $0x288] sm:$0xff]  }
  0x1c   : > { %5494 = vmatprep.subr.bf16.mxu0 %v5784_v8  ;;  %5760 = vmatprep.subr.bf16.mxu1 %v5784_v8  ;;  %v5822_v44 = vld [vmem:[%s5969_s24 + $0x90] sm:$0xff]   ;;  %v5824_v46 = vld [vmem:[%s5969_s24 + $0x98] sm:$0xff]   ;;  %v5826_v48 = vld [vmem:[%s5969_s24 + $0xa0] sm:$0xff]  }
  0x1d   : > { %v5823_v45 = vld [vmem:[%s5969_s24 + $0x290] sm:$0xff]   ;;  %v5825_v47 = vld [vmem:[%s5969_s24 + $0x298] sm:$0xff]   ;;  %v5827_v49 = vld [vmem:[%s5969_s24 + $0x2a0] sm:$0xff]  }
  0x1e   : > { %v5828_v50 = vld [vmem:[%s5969_s24 + $0xa8] sm:$0xff]   ;;  %v5830_v52 = vld [vmem:[%s5969_s24 + $0xb0] sm:$0xff]   ;;  %v5832_v54 = vld [vmem:[%s5969_s24 + $0xb8] sm:$0xff]  }
  0x1f   : > { %5495 = vmatpush3.bf16.msra.mxu0 %v5784_v8  ;;  %5768 = vmatpush3.bf16.msra.mxu1 %v5784_v8  ;;  %v5829_v51 = vld [vmem:[%s5969_s24 + $0x2a8] sm:$0xff]   ;;  %v5831_v53 = vld [vmem:[%s5969_s24 + $0x2b0] sm:$0xff]   ;;  %v5833_v55 = vld [vmem:[%s5969_s24 + $0x2b8] sm:$0xff]  }
  0x20   : > { %5496 = vmatprep.subr.bf16.mxu0 %v5785_v9  ;;  %5761 = vmatprep.subr.bf16.mxu1 %v5785_v9  ;;  %v5834_v56 = vld [vmem:[%s5969_s24 + $0xc0] sm:$0xff]   ;;  %v5836_v58 = vld [vmem:[%s5969_s24 + $0xc8] sm:$0xff]   ;;  %v5838_v60 = vld [vmem:[%s5969_s24 + $0xd0] sm:$0xff]  }
  0x21   : > { %v5835_v57 = vld [vmem:[%s5969_s24 + $0x2c0] sm:$0xff]   ;;  %v5837_v59 = vld [vmem:[%s5969_s24 + $0x2c8] sm:$0xff]   ;;  %v5839_v61 = vld [vmem:[%s5969_s24 + $0x2d0] sm:$0xff]  }
  0x22   : > { %v5840_v62 = vld [vmem:[%s5969_s24 + $0xd8] sm:$0xff]   ;;  %v5842_v0 = vld [vmem:[%s5969_s24 + $0xe0] sm:$0xff]   ;;  %v5844_v2 = vld [vmem:[%s5969_s24 + $0xe8] sm:$0xff]  }
  0x23   : > { %5497 = vmatpush3.bf16.msra.mxu0 %v5785_v9  ;;  %5769 = vmatpush3.bf16.msra.mxu1 %v5785_v9  ;;  %v5841_v63 = vld [vmem:[%s5969_s24 + $0x2d8] sm:$0xff]   ;;  %v5843_v1 = vld [vmem:[%s5969_s24 + $0x2e0] sm:$0xff]   ;;  %v5845_v3 = vld [vmem:[%s5969_s24 + $0x2e8] sm:$0xff]  }
  0x24   : > { %v5846_v4 = vld [vmem:[%s5969_s24 + $0xf0] sm:$0xff]   ;;  %v5848_v6 = vld [vmem:[%s5969_s24 + $0xf8] sm:$0xff]   ;;  %v5850_v8 = vld [vmem:[%s5969_s24 + $0x100] sm:$0xff]  }
  0x25   : > { %v5847_v5 = vld [vmem:[%s5969_s24 + $0x2f0] sm:$0xff]   ;;  %v5849_v7 = vld [vmem:[%s5969_s24 + $0x2f8] sm:$0xff]   ;;  %v5851_v9 = vld [vmem:[%s5969_s24 + $0x300] sm:$0xff]  }
  0x26   : > { %5499 = vmatmul.mubr.bf16.vlgmr.msra.gmra.mrb[0].mxu0 %v5788_v10  ;;  %5627 = vmatmul.mubr.bf16.vlgmr.msra.gmra.mrb[0].mxu1 %v5789_v11  ;;  %v5852_v10 = vld [vmem:[%s5969_s24 + $0x108] sm:$0xff]  }
  0x27   : > { %5502 = vmatprep.mubr.bf16.mxu0 %v5790_v12  ;;  %5630 = vmatprep.mubr.bf16.mxu1 %v5791_v13  ;;  %v5853_v11 = vld [vmem:[%s5969_s24 + $0x308] sm:$0xff]   ;;  %v5854_v12 = vld [vmem:[%s5969_s24 + $0x110] sm:$0xff]  }
  0x28   : > { %v5855_v13 = vld [vmem:[%s5969_s24 + $0x310] sm:$0xff]  }
  0x2e   : > { %5503 = vmatmul.mubr.bf16.gmra.mrb[4].mxu0 %v5792_v14  ;;  %5631 = vmatmul.mubr.bf16.gmra.mrb[4].mxu1 %v5793_v15  ;;  %v5856_v14 = vld [vmem:[%s5969_s24 + $0x118] sm:$0xff]  }
  0x2f   : > { %5506 = vmatprep.mubr.bf16.mxu0 %v5794_v16  ;;  %5634 = vmatprep.mubr.bf16.mxu1 %v5795_v17  ;;  %v5857_v15 = vld [vmem:[%s5969_s24 + $0x318] sm:$0xff]   ;;  %v5858_v16 = vld [vmem:[%s5969_s24 + $0x120] sm:$0xff]  }
  0x30   : > { %v5859_v17 = vld [vmem:[%s5969_s24 + $0x320] sm:$0xff]  }
  0x36   : > { %5507 = vmatmul.mubr.bf16.gmra.mrb[8].mxu0 %v5796_v18  ;;  %5635 = vmatmul.mubr.bf16.gmra.mrb[8].mxu1 %v5797_v19  ;;  %v5860_v18 = vld [vmem:[%s5969_s24 + $0x128] sm:$0xff]  }
  0x37   : > { %5510 = vmatprep.mubr.bf16.mxu0 %v5798_v20  ;;  %5638 = vmatprep.mubr.bf16.mxu1 %v5799_v21  ;;  %v5861_v19 = vld [vmem:[%s5969_s24 + $0x328] sm:$0xff]   ;;  %v5862_v20 = vld [vmem:[%s5969_s24 + $0x130] sm:$0xff]  }
  0x38   : > { %v5863_v21 = vld [vmem:[%s5969_s24 + $0x330] sm:$0xff]  }
  0x3e   : > { %5511 = vmatmul.mubr.bf16.gmra.mrb[12].mxu0 %v5800_v22  ;;  %5639 = vmatmul.mubr.bf16.gmra.mrb[12].mxu1 %v5801_v23  ;;  %v5864_v22 = vld [vmem:[%s5969_s24 + $0x138] sm:$0xff]  }
  0x3f   : > { %5514 = vmatprep.mubr.bf16.mxu0 %v5802_v24  ;;  %5642 = vmatprep.mubr.bf16.mxu1 %v5803_v25  ;;  %v5865_v23 = vld [vmem:[%s5969_s24 + $0x338] sm:$0xff]   ;;  %v5866_v24 = vld [vmem:[%s5969_s24 + $0x140] sm:$0xff]  }
  0x40   : > { %v5867_v25 = vld [vmem:[%s5969_s24 + $0x340] sm:$0xff]  }
  0x46   : > { %5515 = vmatmul.mubr.bf16.gmra.mrb[16].mxu0 %v5804_v26  ;;  %5643 = vmatmul.mubr.bf16.gmra.mrb[16].mxu1 %v5805_v27  ;;  %v5868_v26 = vld [vmem:[%s5969_s24 + $0x148] sm:$0xff]  }
  0x47   : > { %5518 = vmatprep.mubr.bf16.mxu0 %v5806_v28  ;;  %5646 = vmatprep.mubr.bf16.mxu1 %v5807_v29  ;;  %v5869_v27 = vld [vmem:[%s5969_s24 + $0x348] sm:$0xff]   ;;  %v5870_v28 = vld [vmem:[%s5969_s24 + $0x150] sm:$0xff]  }
  0x48   : > { %v5871_v29 = vld [vmem:[%s5969_s24 + $0x350] sm:$0xff]  }
  0x4e   : > { %5519 = vmatmul.mubr.bf16.gmra.mrb[20].mxu0 %v5808_v30  ;;  %5647 = vmatmul.mubr.bf16.gmra.mrb[20].mxu1 %v5809_v31  ;;  %v5872_v30 = vld [vmem:[%s5969_s24 + $0x158] sm:$0xff]  }
  0x4f   : > { %5522 = vmatprep.mubr.bf16.mxu0 %v5810_v32  ;;  %5650 = vmatprep.mubr.bf16.mxu1 %v5811_v33  ;;  %v5873_v31 = vld [vmem:[%s5969_s24 + $0x358] sm:$0xff]   ;;  %v5874_v32 = vld [vmem:[%s5969_s24 + $0x160] sm:$0xff]  }
  0x50   : > { %v5875_v33 = vld [vmem:[%s5969_s24 + $0x360] sm:$0xff]  }
  0x56   : > { %5523 = vmatmul.mubr.bf16.gmra.mrb[24].mxu0 %v5812_v34  ;;  %5651 = vmatmul.mubr.bf16.gmra.mrb[24].mxu1 %v5813_v35  ;;  %v5876_v34 = vld [vmem:[%s5969_s24 + $0x168] sm:$0xff]  }
  0x57   : > { %5526 = vmatprep.mubr.bf16.mxu0 %v5814_v36  ;;  %5654 = vmatprep.mubr.bf16.mxu1 %v5815_v37  ;;  %v5877_v35 = vld [vmem:[%s5969_s24 + $0x368] sm:$0xff]   ;;  %v5878_v36 = vld [vmem:[%s5969_s24 + $0x170] sm:$0xff]  }
  0x58   : > { %v5879_v37 = vld [vmem:[%s5969_s24 + $0x370] sm:$0xff]  }
  0x5e   : > { %5527 = vmatmul.mubr.bf16.gmra.mrb[28].mxu0 %v5816_v38  ;;  %5655 = vmatmul.mubr.bf16.gmra.mrb[28].mxu1 %v5817_v39  ;;  %v5880_v38 = vld [vmem:[%s5969_s24 + $0x178] sm:$0xff]  }
  0x5f   : > { %5530 = vmatprep.mubr.bf16.mxu0 %v5818_v40  ;;  %5658 = vmatprep.mubr.bf16.mxu1 %v5819_v41  ;;  %v5881_v39 = vld [vmem:[%s5969_s24 + $0x378] sm:$0xff]   ;;  %v5882_v40 = vld [vmem:[%s5969_s24 + $0x180] sm:$0xff]  }
  0x60   : > { %v5883_v41 = vld [vmem:[%s5969_s24 + $0x380] sm:$0xff]  }
  0x66   : > { %5531 = vmatmul.mubr.bf16.gmra.mrb[32].mxu0 %v5820_v42  ;;  %5659 = vmatmul.mubr.bf16.gmra.mrb[32].mxu1 %v5821_v43  ;;  %v5884_v42 = vld [vmem:[%s5969_s24 + $0x188] sm:$0xff]  }
  0x67   : > { %5534 = vmatprep.mubr.bf16.mxu0 %v5822_v44  ;;  %5662 = vmatprep.mubr.bf16.mxu1 %v5823_v45  ;;  %v5885_v43 = vld [vmem:[%s5969_s24 + $0x388] sm:$0xff]   ;;  %v5886_v44 = vld [vmem:[%s5969_s24 + $0x190] sm:$0xff]  }
  0x68   : > { %v5887_v45 = vld [vmem:[%s5969_s24 + $0x390] sm:$0xff]  }
  0x6e   : > { %5535 = vmatmul.mubr.bf16.gmra.mrb[36].mxu0 %v5824_v46  ;;  %5663 = vmatmul.mubr.bf16.gmra.mrb[36].mxu1 %v5825_v47  ;;  %v5888_v46 = vld [vmem:[%s5969_s24 + $0x198] sm:$0xff]  }
  0x6f   : > { %5538 = vmatprep.mubr.bf16.mxu0 %v5826_v48  ;;  %5666 = vmatprep.mubr.bf16.mxu1 %v5827_v49  ;;  %v5889_v47 = vld [vmem:[%s5969_s24 + $0x398] sm:$0xff]   ;;  %v5890_v48 = vld [vmem:[%s5969_s24 + $0x1a0] sm:$0xff]  }
  0x70   : > { %v5891_v49 = vld [vmem:[%s5969_s24 + $0x3a0] sm:$0xff]  }
  0x76   : > { %5539 = vmatmul.mubr.bf16.gmra.mrb[40].mxu0 %v5828_v50  ;;  %5667 = vmatmul.mubr.bf16.gmra.mrb[40].mxu1 %v5829_v51  ;;  %v5892_v50 = vld [vmem:[%s5969_s24 + $0x1a8] sm:$0xff]  }
  0x77   : > { %5542 = vmatprep.mubr.bf16.mxu0 %v5830_v52  ;;  %5670 = vmatprep.mubr.bf16.mxu1 %v5831_v53  ;;  %v5893_v51 = vld [vmem:[%s5969_s24 + $0x3a8] sm:$0xff]   ;;  %v5894_v52 = vld [vmem:[%s5969_s24 + $0x1b0] sm:$0xff]  }
  0x78   : > { %v5895_v53 = vld [vmem:[%s5969_s24 + $0x3b0] sm:$0xff]  }
  0x7e   : > { %5543 = vmatmul.mubr.bf16.gmra.mrb[44].mxu0 %v5832_v54  ;;  %5671 = vmatmul.mubr.bf16.gmra.mrb[44].mxu1 %v5833_v55  ;;  %v6099_v54 = vld [vmem:[%s6515_s2] ss:$0 sm:$0xff] }
  0x7f   : > { %5546 = vmatprep.mubr.bf16.mxu0 %v5834_v56  ;;  %5674 = vmatprep.mubr.bf16.mxu1 %v5835_v57 }
  0x86   : > { %5547 = vmatmul.mubr.bf16.gmra.mrb[48].mxu0 %v5836_v58  ;;  %5675 = vmatmul.mubr.bf16.gmra.mrb[48].mxu1 %v5837_v59 }
  0x87   : > { %5550 = vmatprep.mubr.bf16.mxu0 %v5838_v60  ;;  %5678 = vmatprep.mubr.bf16.mxu1 %v5839_v61  ;;  %v5896_v61 = vld [vmem:[%s5969_s24 + $0x1b8] sm:$0xff]  }
  0x8e   : > { %5551 = vmatmul.mubr.bf16.gmra.mrb[52].mxu0 %v5840_v62  ;;  %5679 = vmatmul.mubr.bf16.gmra.mrb[52].mxu1 %v5841_v63  ;;  %v5897_v62 = vld [vmem:[%s5969_s24 + $0x3b8] sm:$0xff]  }
  0x8f   : > { %5554 = vmatprep.mubr.bf16.mxu0 %v5842_v0  ;;  %5682 = vmatprep.mubr.bf16.mxu1 %v5843_v1 }
  0x96   : > { %5555 = vmatmul.mubr.bf16.gmra.mrb[56].mxu0 %v5844_v2  ;;  %5683 = vmatmul.mubr.bf16.gmra.mrb[56].mxu1 %v5845_v3  ;;  %v5898_v3 = vld [vmem:[%s5969_s24 + $0x1c0] sm:$0xff]  }
  0x97   : > { %5558 = vmatprep.mubr.bf16.mxu0 %v5846_v4  ;;  %5686 = vmatprep.mubr.bf16.mxu1 %v5847_v5  ;;  %v5899_v4 = vld [vmem:[%s5969_s24 + $0x3c0] sm:$0xff]  }
  0x9e   : > { %5559 = vmatmul.mubr.bf16.gmra.mrb[60].mxu0 %v5848_v6  ;;  %5687 = vmatmul.mubr.bf16.gmra.mrb[60].mxu1 %v5849_v7 }
  0x9f   : > { %5562 = vmatprep.mubr.bf16.mxu0 %v5850_v8  ;;  %5690 = vmatprep.mubr.bf16.mxu1 %v5851_v9 }
  0xa6   : > { %5563 = vmatmul.mubr.bf16.gmra.mrb[64].mxu0 %v5852_v10  ;;  %5691 = vmatmul.mubr.bf16.gmra.mrb[64].mxu1 %v5853_v11 }
  0xa7   : > { %5566 = vmatprep.mubr.bf16.mxu0 %v5854_v12  ;;  %5694 = vmatprep.mubr.bf16.mxu1 %v5855_v13 }
  0xae   : > { %5567 = vmatmul.mubr.bf16.gmra.mrb[68].mxu0 %v5856_v14  ;;  %5695 = vmatmul.mubr.bf16.gmra.mrb[68].mxu1 %v5857_v15 }
  0xaf   : > { %5570 = vmatprep.mubr.bf16.mxu0 %v5858_v16  ;;  %5698 = vmatprep.mubr.bf16.mxu1 %v5859_v17 }
  0xb6   : > { %5571 = vmatmul.mubr.bf16.gmra.mrb[72].mxu0 %v5860_v18  ;;  %5699 = vmatmul.mubr.bf16.gmra.mrb[72].mxu1 %v5861_v19 }
  0xb7   : > { %5574 = vmatprep.mubr.bf16.mxu0 %v5862_v20  ;;  %5702 = vmatprep.mubr.bf16.mxu1 %v5863_v21 }
  0xbe   : > { %5575 = vmatmul.mubr.bf16.gmra.mrb[76].mxu0 %v5864_v22  ;;  %5703 = vmatmul.mubr.bf16.gmra.mrb[76].mxu1 %v5865_v23 }
  0xbf   : > { %5578 = vmatprep.mubr.bf16.mxu0 %v5866_v24  ;;  %5706 = vmatprep.mubr.bf16.mxu1 %v5867_v25 }
  0xc6   : > { %5579 = vmatmul.mubr.bf16.gmra.mrb[80].mxu0 %v5868_v26  ;;  %5707 = vmatmul.mubr.bf16.gmra.mrb[80].mxu1 %v5869_v27 }
  0xc7   : > { %5582 = vmatprep.mubr.bf16.mxu0 %v5870_v28  ;;  %5710 = vmatprep.mubr.bf16.mxu1 %v5871_v29  ;;  %v5900_v29 = vld [vmem:[%s5969_s24 + $0x1c8] sm:$0xff]  }
  0xce   : > { %5583 = vmatmul.mubr.bf16.gmra.mrb[84].mxu0 %v5872_v30  ;;  %5711 = vmatmul.mubr.bf16.gmra.mrb[84].mxu1 %v5873_v31  ;;  %v5901_v30 = vld [vmem:[%s5969_s24 + $0x3c8] sm:$0xff]  }
  0xcf   : > { %5586 = vmatprep.mubr.bf16.mxu0 %v5874_v32  ;;  %5714 = vmatprep.mubr.bf16.mxu1 %v5875_v33 }
  0xd6   : > { %5587 = vmatmul.mubr.bf16.gmra.mrb[88].mxu0 %v5876_v34  ;;  %5715 = vmatmul.mubr.bf16.gmra.mrb[88].mxu1 %v5877_v35  ;;  %v5902_v35 = vld [vmem:[%s5969_s24 + $0x1d0] sm:$0xff]  }
  0xd7   : > { %5590 = vmatprep.mubr.bf16.mxu0 %v5878_v36  ;;  %5718 = vmatprep.mubr.bf16.mxu1 %v5879_v37  ;;  %v5903_v36 = vld [vmem:[%s5969_s24 + $0x3d0] sm:$0xff]  }
  0xde   : > { %5591 = vmatmul.mubr.bf16.gmra.mrb[92].mxu0 %v5880_v38  ;;  %5719 = vmatmul.mubr.bf16.gmra.mrb[92].mxu1 %v5881_v39 }
  0xdf   : > { %5594 = vmatprep.mubr.bf16.mxu0 %v5882_v40  ;;  %5722 = vmatprep.mubr.bf16.mxu1 %v5883_v41 }
  0xe6   : > { %5595 = vmatmul.mubr.bf16.gmra.mrb[96].mxu0 %v5884_v42  ;;  %5723 = vmatmul.mubr.bf16.gmra.mrb[96].mxu1 %v5885_v43 }
  0xe7   : > { %5598 = vmatprep.mubr.bf16.mxu0 %v5886_v44  ;;  %5726 = vmatprep.mubr.bf16.mxu1 %v5887_v45 }
  0xee   : > { %5599 = vmatmul.mubr.bf16.gmra.mrb[100].mxu0 %v5888_v46  ;;  %5727 = vmatmul.mubr.bf16.gmra.mrb[100].mxu1 %v5889_v47 }
  0xef   : > { %5602 = vmatprep.mubr.bf16.mxu0 %v5890_v48  ;;  %5730 = vmatprep.mubr.bf16.mxu1 %v5891_v49 }
  0xf6   : > { %5603 = vmatmul.mubr.bf16.gmra.mrb[104].mxu0 %v5892_v50  ;;  %5731 = vmatmul.mubr.bf16.gmra.mrb[104].mxu1 %v5893_v51 }
  0xf7   : > { %5606 = vmatprep.mubr.bf16.mxu0 %v5894_v52  ;;  %5734 = vmatprep.mubr.bf16.mxu1 %v5895_v53 }
  0xf9   : > { %v5500_v55 = vpop.f32.mrb[0].mxu0  ;;  %v5628_v56 = vpop.f32.mrb[0].mxu1 }
  0xfa   : > { %v1313_v57 = vadd.f32 %v5500_v55, %v6099_v54  ;;  %v1825_v58 = vadd.f32 %v5628_v56, %v6099_v54  ;;  %v1304_v59 = vpop.f32.mrb[1].mxu0  ;;  %v1816_v60 = vpop.f32.mrb[1].mxu1 }
  0xfb   : > { %v1305_v63 = vadd.f32 %v6099_v54, %v1304_v59  ;;  %v1817_v0 = vadd.f32 %v6099_v54, %v1816_v60  ;;  %v5501_v1 = vpop.f32.mrb[2].mxu0  ;;  %v5629_v2 = vpop.f32.mrb[2].mxu1 }
  0xfc   : > { %v1316_v5 = vadd.f32 %v5501_v1, %v6099_v54  ;;  %v1828_v6 = vadd.f32 %v5629_v2, %v6099_v54  ;;  %v1307_v7 = vpop.f32.mrb[3].mxu0  ;;  %v1819_v8 = vpop.f32.mrb[3].mxu1  ;;  %v2329_v11 = vmax.f32 %v1313_v57, 0.0  ;;  %v2457_v12 = vmax.f32 %v1825_v58, 0.0 }
  0xfd   : > { %v1308_v9 = vadd.f32 %v6099_v54, %v1307_v7  ;;  %v1820_v10 = vadd.f32 %v6099_v54, %v1819_v8  ;;  %v2327_v15 = vmax.f32 %v1305_v63, 0.0  ;;  %v2455_v16 = vmax.f32 %v1817_v0, 0.0  ;;  %v5905_v63 = vld [vmem:[%s5969_s24 + $0x3d8] sm:$0xff]  }
  0xfe   : > { %v2330_v13 = vmax.f32 %v1316_v5, 0.0  ;;  %v2458_v14 = vmax.f32 %v1828_v6, 0.0  ;;  %5607 = vmatmul.mubr.bf16.gmra.mrb[108].mxu0 %v5896_v61  ;;  %5735 = vmatmul.mubr.bf16.gmra.mrb[108].mxu1 %v5897_v62  ;;  %v5904_v62 = vld [vmem:[%s5969_s24 + $0x1d8] sm:$0xff]   ;;  %v5907_v5 = vld [vmem:[%s5969_s24 + $0x3e0] sm:$0xff]  }
  0xff   : > { %v2328_v17 = vmax.f32 %v1308_v9, 0.0  ;;  %v2456_v18 = vmax.f32 %v1820_v10, 0.0  ;;  %5610 = vmatprep.mubr.bf16.mxu0 %v5898_v3  ;;  %5738 = vmatprep.mubr.bf16.mxu1 %v5899_v4  ;;  %v5906_v4 = vld [vmem:[%s5969_s24 + $0x1e0] sm:$0xff]  }
 0x100   : > { %v4587_v19 = vpack.c.bf16 %v2330_v13, %v2329_v11  ;;  %v4907_v20 = vpack.c.bf16 %v2458_v14, %v2457_v12 }
 0x101   : > { %v4582_v21 = vpack.c.bf16 %v2328_v17, %v2327_v15  ;;  %v4902_v22 = vpack.c.bf16 %v2456_v18, %v2455_v16  ;;  %v5504_v23 = vpop.f32.mrb[4].mxu0  ;;  %v5632_v24 = vpop.f32.mrb[4].mxu1 }
 0x102   : > { %5219 = vst [vmem:[%s6118_s13 + $0x8] sm:$0xff] %v4587_v19   ;;  %5283 = vst [vmem:[%s6118_s13 + $0x208] sm:$0xff] %v4907_v20   ;;  %v1329_v25 = vadd.f32 %v5504_v23, %v6099_v54  ;;  %v1841_v26 = vadd.f32 %v5632_v24, %v6099_v54  ;;  %v1320_v27 = vpop.f32.mrb[5].mxu0  ;;  %v1832_v28 = vpop.f32.mrb[5].mxu1 }
 0x103   : > { %4583 = vst [vmem:[%s6118_s13] sm:$0xff] %v4582_v21   ;;  %5282 = vst [vmem:[%s6118_s13 + $0x200] sm:$0xff] %v4902_v22   ;;  %v1321_v31 = vadd.f32 %v6099_v54, %v1320_v27  ;;  %v1833_v32 = vadd.f32 %v6099_v54, %v1832_v28  ;;  %v5505_v33 = vpop.f32.mrb[6].mxu0  ;;  %v5633_v34 = vpop.f32.mrb[6].mxu1 }
 0x104   : > { %v1332_v37 = vadd.f32 %v5505_v33, %v6099_v54  ;;  %v1844_v38 = vadd.f32 %v5633_v34, %v6099_v54  ;;  %v1323_v39 = vpop.f32.mrb[7].mxu0  ;;  %v1835_v40 = vpop.f32.mrb[7].mxu1  ;;  %v2333_v43 = vmax.f32 %v1329_v25, 0.0  ;;  %v2461_v44 = vmax.f32 %v1841_v26, 0.0 }
 0x105   : > { %v1324_v41 = vadd.f32 %v6099_v54, %v1323_v39  ;;  %v1836_v42 = vadd.f32 %v6099_v54, %v1835_v40  ;;  %v2331_v47 = vmax.f32 %v1321_v31, 0.0  ;;  %v2459_v48 = vmax.f32 %v1833_v32, 0.0  ;;  %v5909_v31 = vld [vmem:[%s5969_s24 + $0x3e8] sm:$0xff]  }
 0x106   : > { %v2334_v45 = vmax.f32 %v1332_v37, 0.0  ;;  %v2462_v46 = vmax.f32 %v1844_v38, 0.0  ;;  %5611 = vmatmul.mubr.bf16.gmra.mrb[112].mxu0 %v5900_v29  ;;  %5739 = vmatmul.mubr.bf16.gmra.mrb[112].mxu1 %v5901_v30  ;;  %v5908_v30 = vld [vmem:[%s5969_s24 + $0x1e8] sm:$0xff]   ;;  %v5911_v37 = vld [vmem:[%s5969_s24 + $0x3f0] sm:$0xff]  }
 0x107   : > { %v2332_v49 = vmax.f32 %v1324_v41, 0.0  ;;  %v2460_v50 = vmax.f32 %v1836_v42, 0.0  ;;  %5614 = vmatprep.mubr.bf16.mxu0 %v5902_v35  ;;  %5742 = vmatprep.mubr.bf16.mxu1 %v5903_v36  ;;  %v5910_v36 = vld [vmem:[%s5969_s24 + $0x1f0] sm:$0xff]  }
 0x108   : > { %v4597_v51 = vpack.c.bf16 %v2334_v45, %v2333_v43  ;;  %v4917_v52 = vpack.c.bf16 %v2462_v46, %v2461_v44 }
 0x109   : > { %v4592_v53 = vpack.c.bf16 %v2332_v49, %v2331_v47  ;;  %v4912_v55 = vpack.c.bf16 %v2460_v50, %v2459_v48  ;;  %v5508_v56 = vpop.f32.mrb[8].mxu0  ;;  %v5636_v57 = vpop.f32.mrb[8].mxu1 }
 0x10a   : > { %5221 = vst [vmem:[%s6118_s13 + $0x18] sm:$0xff] %v4597_v51   ;;  %5285 = vst [vmem:[%s6118_s13 + $0x218] sm:$0xff] %v4917_v52   ;;  %v1345_v58 = vadd.f32 %v5508_v56, %v6099_v54  ;;  %v1857_v59 = vadd.f32 %v5636_v57, %v6099_v54  ;;  %v1336_v60 = vpop.f32.mrb[9].mxu0  ;;  %v1848_v61 = vpop.f32.mrb[9].mxu1 }
 0x10b   : > { %5220 = vst [vmem:[%s6118_s13 + $0x10] sm:$0xff] %v4592_v53   ;;  %5284 = vst [vmem:[%s6118_s13 + $0x210] sm:$0xff] %v4912_v55   ;;  %v1337_v0 = vadd.f32 %v6099_v54, %v1336_v60  ;;  %v1849_v1 = vadd.f32 %v6099_v54, %v1848_v61  ;;  %v5509_v2 = vpop.f32.mrb[10].mxu0  ;;  %v5637_v3 = vpop.f32.mrb[10].mxu1 }
 0x10c   : > { %v1348_v6 = vadd.f32 %v5509_v2, %v6099_v54  ;;  %v1860_v7 = vadd.f32 %v5637_v3, %v6099_v54  ;;  %v1339_v8 = vpop.f32.mrb[11].mxu0  ;;  %v1851_v9 = vpop.f32.mrb[11].mxu1  ;;  %v2337_v12 = vmax.f32 %v1345_v58, 0.0  ;;  %v2465_v13 = vmax.f32 %v1857_v59, 0.0 }
 0x10d   : > { %v1340_v10 = vadd.f32 %v6099_v54, %v1339_v8  ;;  %v1852_v11 = vadd.f32 %v6099_v54, %v1851_v9  ;;  %v2335_v16 = vmax.f32 %v1337_v0, 0.0  ;;  %v2463_v17 = vmax.f32 %v1849_v1, 0.0  ;;  %v5913_v0 = vld [vmem:[%s5969_s24 + $0x3f8] sm:$0xff]  }
 0x10e   : > { %v2338_v14 = vmax.f32 %v1348_v6, 0.0  ;;  %v2466_v15 = vmax.f32 %v1860_v7, 0.0  ;;  %5615 = vmatmul.mubr.bf16.gmra.mrb[116].mxu0 %v5904_v62  ;;  %5743 = vmatmul.mubr.bf16.gmra.mrb[116].mxu1 %v5905_v63  ;;  %v5912_v63 = vld [vmem:[%s5969_s24 + $0x1f8] sm:$0xff]  }
 0x10f   : > { %v2336_v18 = vmax.f32 %v1340_v10, 0.0  ;;  %v2464_v19 = vmax.f32 %v1852_v11, 0.0  ;;  %5618 = vmatprep.mubr.bf16.mxu0 %v5906_v4  ;;  %5746 = vmatprep.mubr.bf16.mxu1 %v5907_v5 }
 0x110   : > { %v4607_v20 = vpack.c.bf16 %v2338_v14, %v2337_v12  ;;  %v4927_v21 = vpack.c.bf16 %v2466_v15, %v2465_v13 }
 0x111   : > { %v4602_v22 = vpack.c.bf16 %v2336_v18, %v2335_v16  ;;  %v4922_v23 = vpack.c.bf16 %v2464_v19, %v2463_v17  ;;  %v5512_v24 = vpop.f32.mrb[12].mxu0  ;;  %v5640_v25 = vpop.f32.mrb[12].mxu1 }
 0x112   : > { %5223 = vst [vmem:[%s6118_s13 + $0x28] sm:$0xff] %v4607_v20   ;;  %5287 = vst [vmem:[%s6118_s13 + $0x228] sm:$0xff] %v4927_v21   ;;  %v1361_v26 = vadd.f32 %v5512_v24, %v6099_v54  ;;  %v1873_v27 = vadd.f32 %v5640_v25, %v6099_v54  ;;  %v1352_v28 = vpop.f32.mrb[13].mxu0  ;;  %v1864_v29 = vpop.f32.mrb[13].mxu1 }
 0x113   : > { %5222 = vst [vmem:[%s6118_s13 + $0x20] sm:$0xff] %v4602_v22   ;;  %5286 = vst [vmem:[%s6118_s13 + $0x220] sm:$0xff] %v4922_v23   ;;  %v1353_v32 = vadd.f32 %v6099_v54, %v1352_v28  ;;  %v1865_v33 = vadd.f32 %v6099_v54, %v1864_v29  ;;  %v5513_v34 = vpop.f32.mrb[14].mxu0  ;;  %v5641_v35 = vpop.f32.mrb[14].mxu1 }
 0x114   : > { %v1364_v38 = vadd.f32 %v5513_v34, %v6099_v54  ;;  %v1876_v39 = vadd.f32 %v5641_v35, %v6099_v54  ;;  %v1355_v40 = vpop.f32.mrb[15].mxu0  ;;  %v1867_v41 = vpop.f32.mrb[15].mxu1  ;;  %v2341_v44 = vmax.f32 %v1361_v26, 0.0  ;;  %v2469_v45 = vmax.f32 %v1873_v27, 0.0 }
 0x115   : > { %v1356_v42 = vadd.f32 %v6099_v54, %v1355_v40  ;;  %v1868_v43 = vadd.f32 %v6099_v54, %v1867_v41  ;;  %v2339_v48 = vmax.f32 %v1353_v32, 0.0  ;;  %v2467_v49 = vmax.f32 %v1865_v33, 0.0 }
 0x116   : > { %v2342_v46 = vmax.f32 %v1364_v38, 0.0  ;;  %v2470_v47 = vmax.f32 %v1876_v39, 0.0  ;;  %5619 = vmatmul.mubr.bf16.gmra.mrb[120].mxu0 %v5908_v30  ;;  %5747 = vmatmul.mubr.bf16.gmra.mrb[120].mxu1 %v5909_v31 }
 0x117   : > { %v2340_v50 = vmax.f32 %v1356_v42, 0.0  ;;  %v2468_v51 = vmax.f32 %v1868_v43, 0.0  ;;  %5622 = vmatprep.mubr.bf16.mxu0 %v5910_v36  ;;  %5750 = vmatprep.mubr.bf16.mxu1 %v5911_v37 }
 0x118   : > { %v4617_v52 = vpack.c.bf16 %v2342_v46, %v2341_v44  ;;  %v4937_v53 = vpack.c.bf16 %v2470_v47, %v2469_v45 }
 0x119   : > { %v4612_v55 = vpack.c.bf16 %v2340_v50, %v2339_v48  ;;  %v4932_v56 = vpack.c.bf16 %v2468_v51, %v2467_v49  ;;  %v5516_v57 = vpop.f32.mrb[16].mxu0  ;;  %v5644_v58 = vpop.f32.mrb[16].mxu1 }
 0x11a   : > { %5225 = vst [vmem:[%s6118_s13 + $0x38] sm:$0xff] %v4617_v52   ;;  %5289 = vst [vmem:[%s6118_s13 + $0x238] sm:$0xff] %v4937_v53   ;;  %v1377_v59 = vadd.f32 %v5516_v57, %v6099_v54  ;;  %v1889_v60 = vadd.f32 %v5644_v58, %v6099_v54  ;;  %v1368_v61 = vpop.f32.mrb[17].mxu0  ;;  %v1880_v62 = vpop.f32.mrb[17].mxu1 }
 0x11b   : > { %5224 = vst [vmem:[%s6118_s13 + $0x30] sm:$0xff] %v4612_v55   ;;  %5288 = vst [vmem:[%s6118_s13 + $0x230] sm:$0xff] %v4932_v56   ;;  %v1369_v1 = vadd.f32 %v6099_v54, %v1368_v61  ;;  %v1881_v2 = vadd.f32 %v6099_v54, %v1880_v62  ;;  %v5517_v3 = vpop.f32.mrb[18].mxu0  ;;  %v5645_v4 = vpop.f32.mrb[18].mxu1 }
 0x11c   : > { %v1380_v5 = vadd.f32 %v5517_v3, %v6099_v54  ;;  %v1892_v6 = vadd.f32 %v5645_v4, %v6099_v54  ;;  %v1371_v7 = vpop.f32.mrb[19].mxu0  ;;  %v1883_v8 = vpop.f32.mrb[19].mxu1  ;;  %v2345_v11 = vmax.f32 %v1377_v59, 0.0  ;;  %v2473_v12 = vmax.f32 %v1889_v60, 0.0 }
 0x11d   : > { %v1372_v9 = vadd.f32 %v6099_v54, %v1371_v7  ;;  %v1884_v10 = vadd.f32 %v6099_v54, %v1883_v8  ;;  %v2343_v15 = vmax.f32 %v1369_v1, 0.0  ;;  %v2471_v16 = vmax.f32 %v1881_v2, 0.0 }
 0x11e   : > { %v2346_v13 = vmax.f32 %v1380_v5, 0.0  ;;  %v2474_v14 = vmax.f32 %v1892_v6, 0.0  ;;  %5623 = vmatmul.mubr.bf16.gmra.mrb[124].mxu0 %v5912_v63  ;;  %5751 = vmatmul.mubr.bf16.gmra.mrb[124].mxu1 %v5913_v0 }
 0x11f   : > { %v2344_v17 = vmax.f32 %v1372_v9, 0.0  ;;  %v2472_v18 = vmax.f32 %v1884_v10, 0.0 }
 0x120   : > { %v4627_v19 = vpack.c.bf16 %v2346_v13, %v2345_v11  ;;  %v4947_v20 = vpack.c.bf16 %v2474_v14, %v2473_v12 }
 0x121   : > { %v4622_v21 = vpack.c.bf16 %v2344_v17, %v2343_v15  ;;  %v4942_v22 = vpack.c.bf16 %v2472_v18, %v2471_v16  ;;  %v5520_v23 = vpop.f32.mrb[20].mxu0  ;;  %v5648_v24 = vpop.f32.mrb[20].mxu1 }
 0x122   : > { %5227 = vst [vmem:[%s6118_s13 + $0x48] sm:$0xff] %v4627_v19   ;;  %5291 = vst [vmem:[%s6118_s13 + $0x248] sm:$0xff] %v4947_v20   ;;  %v1393_v25 = vadd.f32 %v5520_v23, %v6099_v54  ;;  %v1905_v26 = vadd.f32 %v5648_v24, %v6099_v54  ;;  %v1384_v27 = vpop.f32.mrb[21].mxu0  ;;  %v1896_v28 = vpop.f32.mrb[21].mxu1 }
 0x123   : > { %5226 = vst [vmem:[%s6118_s13 + $0x40] sm:$0xff] %v4622_v21   ;;  %5290 = vst [vmem:[%s6118_s13 + $0x240] sm:$0xff] %v4942_v22   ;;  %v1385_v29 = vadd.f32 %v6099_v54, %v1384_v27  ;;  %v1897_v30 = vadd.f32 %v6099_v54, %v1896_v28  ;;  %v5521_v31 = vpop.f32.mrb[22].mxu0  ;;  %v5649_v32 = vpop.f32.mrb[22].mxu1 }
 0x124   : > { %v1396_v33 = vadd.f32 %v5521_v31, %v6099_v54  ;;  %v1908_v34 = vadd.f32 %v5649_v32, %v6099_v54  ;;  %v1387_v35 = vpop.f32.mrb[23].mxu0  ;;  %v1899_v36 = vpop.f32.mrb[23].mxu1  ;;  %v2349_v39 = vmax.f32 %v1393_v25, 0.0  ;;  %v2477_v40 = vmax.f32 %v1905_v26, 0.0 }
 0x125   : > { %v1388_v37 = vadd.f32 %v6099_v54, %v1387_v35  ;;  %v1900_v38 = vadd.f32 %v6099_v54, %v1899_v36  ;;  %v2347_v43 = vmax.f32 %v1385_v29, 0.0  ;;  %v2475_v44 = vmax.f32 %v1897_v30, 0.0 }
 0x126   : > { %v2350_v41 = vmax.f32 %v1396_v33, 0.0  ;;  %v2478_v42 = vmax.f32 %v1908_v34, 0.0 }
 0x127   : > { %v2348_v45 = vmax.f32 %v1388_v37, 0.0  ;;  %v2476_v46 = vmax.f32 %v1900_v38, 0.0 }
 0x128   : > { %v4637_v47 = vpack.c.bf16 %v2350_v41, %v2349_v39  ;;  %v4957_v48 = vpack.c.bf16 %v2478_v42, %v2477_v40 }
 0x129   : > { %v4632_v49 = vpack.c.bf16 %v2348_v45, %v2347_v43  ;;  %v4952_v50 = vpack.c.bf16 %v2476_v46, %v2475_v44  ;;  %v5524_v51 = vpop.f32.mrb[24].mxu0  ;;  %v5652_v52 = vpop.f32.mrb[24].mxu1 }
 0x12a   : > { %5229 = vst [vmem:[%s6118_s13 + $0x58] sm:$0xff] %v4637_v47   ;;  %5293 = vst [vmem:[%s6118_s13 + $0x258] sm:$0xff] %v4957_v48   ;;  %v1409_v53 = vadd.f32 %v5524_v51, %v6099_v54  ;;  %v1921_v55 = vadd.f32 %v5652_v52, %v6099_v54  ;;  %v1400_v56 = vpop.f32.mrb[25].mxu0  ;;  %v1912_v57 = vpop.f32.mrb[25].mxu1 }
 0x12b   : > { %5228 = vst [vmem:[%s6118_s13 + $0x50] sm:$0xff] %v4632_v49   ;;  %5292 = vst [vmem:[%s6118_s13 + $0x250] sm:$0xff] %v4952_v50   ;;  %v1401_v58 = vadd.f32 %v6099_v54, %v1400_v56  ;;  %v1913_v59 = vadd.f32 %v6099_v54, %v1912_v57  ;;  %v5525_v60 = vpop.f32.mrb[26].mxu0  ;;  %v5653_v61 = vpop.f32.mrb[26].mxu1 }
 0x12c   : > { %v1412_v62 = vadd.f32 %v5525_v60, %v6099_v54  ;;  %v1924_v63 = vadd.f32 %v5653_v61, %v6099_v54  ;;  %v1403_v0 = vpop.f32.mrb[27].mxu0  ;;  %v1915_v1 = vpop.f32.mrb[27].mxu1  ;;  %v2353_v4 = vmax.f32 %v1409_v53, 0.0  ;;  %v2481_v5 = vmax.f32 %v1921_v55, 0.0 }
 0x12d   : > { %v1404_v2 = vadd.f32 %v6099_v54, %v1403_v0  ;;  %v1916_v3 = vadd.f32 %v6099_v54, %v1915_v1  ;;  %v2351_v8 = vmax.f32 %v1401_v58, 0.0  ;;  %v2479_v9 = vmax.f32 %v1913_v59, 0.0 }
 0x12e   : > { %v2354_v6 = vmax.f32 %v1412_v62, 0.0  ;;  %v2482_v7 = vmax.f32 %v1924_v63, 0.0 }
 0x12f   : > { %v2352_v10 = vmax.f32 %v1404_v2, 0.0  ;;  %v2480_v11 = vmax.f32 %v1916_v3, 0.0 }
 0x130   : > { %v4647_v12 = vpack.c.bf16 %v2354_v6, %v2353_v4  ;;  %v4967_v13 = vpack.c.bf16 %v2482_v7, %v2481_v5 }
 0x131   : > { %v4642_v14 = vpack.c.bf16 %v2352_v10, %v2351_v8  ;;  %v4962_v15 = vpack.c.bf16 %v2480_v11, %v2479_v9  ;;  %v5528_v16 = vpop.f32.mrb[28].mxu0  ;;  %v5656_v17 = vpop.f32.mrb[28].mxu1 }
 0x132   : > { %5231 = vst [vmem:[%s6118_s13 + $0x68] sm:$0xff] %v4647_v12   ;;  %5295 = vst [vmem:[%s6118_s13 + $0x268] sm:$0xff] %v4967_v13   ;;  %v1425_v18 = vadd.f32 %v5528_v16, %v6099_v54  ;;  %v1937_v19 = vadd.f32 %v5656_v17, %v6099_v54  ;;  %v1416_v20 = vpop.f32.mrb[29].mxu0  ;;  %v1928_v21 = vpop.f32.mrb[29].mxu1 }
 0x133   : > { %5230 = vst [vmem:[%s6118_s13 + $0x60] sm:$0xff] %v4642_v14   ;;  %5294 = vst [vmem:[%s6118_s13 + $0x260] sm:$0xff] %v4962_v15   ;;  %v1417_v22 = vadd.f32 %v6099_v54, %v1416_v20  ;;  %v1929_v23 = vadd.f32 %v6099_v54, %v1928_v21  ;;  %v5529_v24 = vpop.f32.mrb[30].mxu0  ;;  %v5657_v25 = vpop.f32.mrb[30].mxu1 }
 0x134   : > { %v1428_v26 = vadd.f32 %v5529_v24, %v6099_v54  ;;  %v1940_v27 = vadd.f32 %v5657_v25, %v6099_v54  ;;  %v1419_v28 = vpop.f32.mrb[31].mxu0  ;;  %v1931_v29 = vpop.f32.mrb[31].mxu1  ;;  %v2357_v32 = vmax.f32 %v1425_v18, 0.0  ;;  %v2485_v33 = vmax.f32 %v1937_v19, 0.0 }
 0x135   : > { %v1420_v30 = vadd.f32 %v6099_v54, %v1419_v28  ;;  %v1932_v31 = vadd.f32 %v6099_v54, %v1931_v29  ;;  %v2355_v36 = vmax.f32 %v1417_v22, 0.0  ;;  %v2483_v37 = vmax.f32 %v1929_v23, 0.0 }
 0x136   : > { %v2358_v34 = vmax.f32 %v1428_v26, 0.0  ;;  %v2486_v35 = vmax.f32 %v1940_v27, 0.0 }
 0x137   : > { %v2356_v38 = vmax.f32 %v1420_v30, 0.0  ;;  %v2484_v39 = vmax.f32 %v1932_v31, 0.0 }
 0x138   : > { %v4657_v40 = vpack.c.bf16 %v2358_v34, %v2357_v32  ;;  %v4977_v41 = vpack.c.bf16 %v2486_v35, %v2485_v33 }
 0x139   : > { %v4652_v42 = vpack.c.bf16 %v2356_v38, %v2355_v36  ;;  %v4972_v43 = vpack.c.bf16 %v2484_v39, %v2483_v37  ;;  %v5532_v44 = vpop.f32.mrb[32].mxu0  ;;  %v5660_v45 = vpop.f32.mrb[32].mxu1 }
 0x13a   : > { %5233 = vst [vmem:[%s6118_s13 + $0x78] sm:$0xff] %v4657_v40   ;;  %5297 = vst [vmem:[%s6118_s13 + $0x278] sm:$0xff] %v4977_v41   ;;  %v1441_v46 = vadd.f32 %v5532_v44, %v6099_v54  ;;  %v1953_v47 = vadd.f32 %v5660_v45, %v6099_v54  ;;  %v1432_v48 = vpop.f32.mrb[33].mxu0  ;;  %v1944_v49 = vpop.f32.mrb[33].mxu1 }
 0x13b   : > { %5232 = vst [vmem:[%s6118_s13 + $0x70] sm:$0xff] %v4652_v42   ;;  %5296 = vst [vmem:[%s6118_s13 + $0x270] sm:$0xff] %v4972_v43   ;;  %v1433_v50 = vadd.f32 %v6099_v54, %v1432_v48  ;;  %v1945_v51 = vadd.f32 %v6099_v54, %v1944_v49  ;;  %v5533_v52 = vpop.f32.mrb[34].mxu0  ;;  %v5661_v53 = vpop.f32.mrb[34].mxu1 }
 0x13c   : > { %v1444_v55 = vadd.f32 %v5533_v52, %v6099_v54  ;;  %v1956_v56 = vadd.f32 %v5661_v53, %v6099_v54  ;;  %v1435_v57 = vpop.f32.mrb[35].mxu0  ;;  %v1947_v58 = vpop.f32.mrb[35].mxu1  ;;  %v2361_v61 = vmax.f32 %v1441_v46, 0.0  ;;  %v2489_v62 = vmax.f32 %v1953_v47, 0.0 }
 0x13d   : > { %v1436_v59 = vadd.f32 %v6099_v54, %v1435_v57  ;;  %v1948_v60 = vadd.f32 %v6099_v54, %v1947_v58  ;;  %v2359_v1 = vmax.f32 %v1433_v50, 0.0  ;;  %v2487_v2 = vmax.f32 %v1945_v51, 0.0 }
 0x13e   : > { %v2362_v63 = vmax.f32 %v1444_v55, 0.0  ;;  %v2490_v0 = vmax.f32 %v1956_v56, 0.0 }
 0x13f   : > { %v2360_v3 = vmax.f32 %v1436_v59, 0.0  ;;  %v2488_v4 = vmax.f32 %v1948_v60, 0.0 }
 0x140   : > { %v4667_v5 = vpack.c.bf16 %v2362_v63, %v2361_v61  ;;  %v4987_v6 = vpack.c.bf16 %v2490_v0, %v2489_v62 }
 0x141   : > { %v4662_v7 = vpack.c.bf16 %v2360_v3, %v2359_v1  ;;  %v4982_v8 = vpack.c.bf16 %v2488_v4, %v2487_v2  ;;  %v5536_v9 = vpop.f32.mrb[36].mxu0  ;;  %v5664_v10 = vpop.f32.mrb[36].mxu1 }
 0x142   : > { %5235 = vst [vmem:[%s6118_s13 + $0x88] sm:$0xff] %v4667_v5   ;;  %5299 = vst [vmem:[%s6118_s13 + $0x288] sm:$0xff] %v4987_v6   ;;  %v1457_v11 = vadd.f32 %v5536_v9, %v6099_v54  ;;  %v1969_v12 = vadd.f32 %v5664_v10, %v6099_v54  ;;  %v1448_v13 = vpop.f32.mrb[37].mxu0  ;;  %v1960_v14 = vpop.f32.mrb[37].mxu1 }
 0x143   : > { %5234 = vst [vmem:[%s6118_s13 + $0x80] sm:$0xff] %v4662_v7   ;;  %5298 = vst [vmem:[%s6118_s13 + $0x280] sm:$0xff] %v4982_v8   ;;  %v1449_v15 = vadd.f32 %v6099_v54, %v1448_v13  ;;  %v1961_v16 = vadd.f32 %v6099_v54, %v1960_v14  ;;  %v5537_v17 = vpop.f32.mrb[38].mxu0  ;;  %v5665_v18 = vpop.f32.mrb[38].mxu1 }
 0x144   : > { %v1460_v19 = vadd.f32 %v5537_v17, %v6099_v54  ;;  %v1972_v20 = vadd.f32 %v5665_v18, %v6099_v54  ;;  %v1451_v21 = vpop.f32.mrb[39].mxu0  ;;  %v1963_v22 = vpop.f32.mrb[39].mxu1  ;;  %v2365_v25 = vmax.f32 %v1457_v11, 0.0  ;;  %v2493_v26 = vmax.f32 %v1969_v12, 0.0 }
 0x145   : > { %v1452_v23 = vadd.f32 %v6099_v54, %v1451_v21  ;;  %v1964_v24 = vadd.f32 %v6099_v54, %v1963_v22  ;;  %v2363_v29 = vmax.f32 %v1449_v15, 0.0  ;;  %v2491_v30 = vmax.f32 %v1961_v16, 0.0 }
 0x146   : > { %v2366_v27 = vmax.f32 %v1460_v19, 0.0  ;;  %v2494_v28 = vmax.f32 %v1972_v20, 0.0 }
 0x147   : > { %v2364_v31 = vmax.f32 %v1452_v23, 0.0  ;;  %v2492_v32 = vmax.f32 %v1964_v24, 0.0 }
 0x148   : > { %v4677_v33 = vpack.c.bf16 %v2366_v27, %v2365_v25  ;;  %v4997_v34 = vpack.c.bf16 %v2494_v28, %v2493_v26 }
 0x149   : > { %v4672_v35 = vpack.c.bf16 %v2364_v31, %v2363_v29  ;;  %v4992_v36 = vpack.c.bf16 %v2492_v32, %v2491_v30  ;;  %v5540_v37 = vpop.f32.mrb[40].mxu0  ;;  %v5668_v38 = vpop.f32.mrb[40].mxu1 }
 0x14a   : > { %5237 = vst [vmem:[%s6118_s13 + $0x98] sm:$0xff] %v4677_v33   ;;  %5301 = vst [vmem:[%s6118_s13 + $0x298] sm:$0xff] %v4997_v34   ;;  %v1473_v39 = vadd.f32 %v5540_v37, %v6099_v54  ;;  %v1985_v40 = vadd.f32 %v5668_v38, %v6099_v54  ;;  %v1464_v41 = vpop.f32.mrb[41].mxu0  ;;  %v1976_v42 = vpop.f32.mrb[41].mxu1 }
 0x14b   : > { %5236 = vst [vmem:[%s6118_s13 + $0x90] sm:$0xff] %v4672_v35   ;;  %5300 = vst [vmem:[%s6118_s13 + $0x290] sm:$0xff] %v4992_v36   ;;  %v1465_v43 = vadd.f32 %v6099_v54, %v1464_v41  ;;  %v1977_v44 = vadd.f32 %v6099_v54, %v1976_v42  ;;  %v5541_v45 = vpop.f32.mrb[42].mxu0  ;;  %v5669_v46 = vpop.f32.mrb[42].mxu1 }
 0x14c   : > { %v1476_v47 = vadd.f32 %v5541_v45, %v6099_v54  ;;  %v1988_v48 = vadd.f32 %v5669_v46, %v6099_v54  ;;  %v1467_v49 = vpop.f32.mrb[43].mxu0  ;;  %v1979_v50 = vpop.f32.mrb[43].mxu1  ;;  %v2369_v53 = vmax.f32 %v1473_v39, 0.0  ;;  %v2497_v55 = vmax.f32 %v1985_v40, 0.0 }
 0x14d   : > { %v1468_v51 = vadd.f32 %v6099_v54, %v1467_v49  ;;  %v1980_v52 = vadd.f32 %v6099_v54, %v1979_v50  ;;  %v2367_v58 = vmax.f32 %v1465_v43, 0.0  ;;  %v2495_v59 = vmax.f32 %v1977_v44, 0.0 }
 0x14e   : > { %v2370_v56 = vmax.f32 %v1476_v47, 0.0  ;;  %v2498_v57 = vmax.f32 %v1988_v48, 0.0 }
 0x14f   : > { %v2368_v60 = vmax.f32 %v1468_v51, 0.0  ;;  %v2496_v61 = vmax.f32 %v1980_v52, 0.0 }
 0x150   : > { %v4687_v62 = vpack.c.bf16 %v2370_v56, %v2369_v53  ;;  %v5007_v63 = vpack.c.bf16 %v2498_v57, %v2497_v55 }
 0x151   : > { %v4682_v0 = vpack.c.bf16 %v2368_v60, %v2367_v58  ;;  %v5002_v1 = vpack.c.bf16 %v2496_v61, %v2495_v59  ;;  %v5544_v2 = vpop.f32.mrb[44].mxu0  ;;  %v5672_v3 = vpop.f32.mrb[44].mxu1 }
 0x152   : > { %5239 = vst [vmem:[%s6118_s13 + $0xa8] sm:$0xff] %v4687_v62   ;;  %5303 = vst [vmem:[%s6118_s13 + $0x2a8] sm:$0xff] %v5007_v63   ;;  %v1489_v4 = vadd.f32 %v5544_v2, %v6099_v54  ;;  %v2001_v5 = vadd.f32 %v5672_v3, %v6099_v54  ;;  %v1480_v6 = vpop.f32.mrb[45].mxu0  ;;  %v1992_v7 = vpop.f32.mrb[45].mxu1 }
 0x153   : > { %5238 = vst [vmem:[%s6118_s13 + $0xa0] sm:$0xff] %v4682_v0   ;;  %5302 = vst [vmem:[%s6118_s13 + $0x2a0] sm:$0xff] %v5002_v1   ;;  %v1481_v8 = vadd.f32 %v6099_v54, %v1480_v6  ;;  %v1993_v9 = vadd.f32 %v6099_v54, %v1992_v7  ;;  %v5545_v10 = vpop.f32.mrb[46].mxu0  ;;  %v5673_v11 = vpop.f32.mrb[46].mxu1 }
 0x154   : > { %v1492_v12 = vadd.f32 %v5545_v10, %v6099_v54  ;;  %v2004_v13 = vadd.f32 %v5673_v11, %v6099_v54  ;;  %v1483_v14 = vpop.f32.mrb[47].mxu0  ;;  %v1995_v15 = vpop.f32.mrb[47].mxu1  ;;  %v2373_v18 = vmax.f32 %v1489_v4, 0.0  ;;  %v2501_v19 = vmax.f32 %v2001_v5, 0.0 }
 0x155   : > { %v1484_v16 = vadd.f32 %v6099_v54, %v1483_v14  ;;  %v1996_v17 = vadd.f32 %v6099_v54, %v1995_v15  ;;  %v2371_v22 = vmax.f32 %v1481_v8, 0.0  ;;  %v2499_v23 = vmax.f32 %v1993_v9, 0.0 }
 0x156   : > { %v2374_v20 = vmax.f32 %v1492_v12, 0.0  ;;  %v2502_v21 = vmax.f32 %v2004_v13, 0.0 }
 0x157   : > { %v2372_v24 = vmax.f32 %v1484_v16, 0.0  ;;  %v2500_v25 = vmax.f32 %v1996_v17, 0.0 }
 0x158   : > { %v4697_v26 = vpack.c.bf16 %v2374_v20, %v2373_v18  ;;  %v5017_v27 = vpack.c.bf16 %v2502_v21, %v2501_v19 }
 0x159   : > { %v4692_v28 = vpack.c.bf16 %v2372_v24, %v2371_v22  ;;  %v5012_v29 = vpack.c.bf16 %v2500_v25, %v2499_v23  ;;  %v5548_v30 = vpop.f32.mrb[48].mxu0  ;;  %v5676_v31 = vpop.f32.mrb[48].mxu1 }
 0x15a   : > { %5241 = vst [vmem:[%s6118_s13 + $0xb8] sm:$0xff] %v4697_v26   ;;  %5305 = vst [vmem:[%s6118_s13 + $0x2b8] sm:$0xff] %v5017_v27   ;;  %v1505_v32 = vadd.f32 %v5548_v30, %v6099_v54  ;;  %v2017_v33 = vadd.f32 %v5676_v31, %v6099_v54  ;;  %v1496_v34 = vpop.f32.mrb[49].mxu0  ;;  %v2008_v35 = vpop.f32.mrb[49].mxu1 }
 0x15b   : > { %5240 = vst [vmem:[%s6118_s13 + $0xb0] sm:$0xff] %v4692_v28   ;;  %5304 = vst [vmem:[%s6118_s13 + $0x2b0] sm:$0xff] %v5012_v29   ;;  %v1497_v36 = vadd.f32 %v6099_v54, %v1496_v34  ;;  %v2009_v37 = vadd.f32 %v6099_v54, %v2008_v35  ;;  %v5549_v38 = vpop.f32.mrb[50].mxu0  ;;  %v5677_v39 = vpop.f32.mrb[50].mxu1 }
 0x15c   : > { %v1508_v40 = vadd.f32 %v5549_v38, %v6099_v54  ;;  %v2020_v41 = vadd.f32 %v5677_v39, %v6099_v54  ;;  %v1499_v42 = vpop.f32.mrb[51].mxu0  ;;  %v2011_v43 = vpop.f32.mrb[51].mxu1  ;;  %v2377_v46 = vmax.f32 %v1505_v32, 0.0  ;;  %v2505_v47 = vmax.f32 %v2017_v33, 0.0 }
 0x15d   : > { %v1500_v44 = vadd.f32 %v6099_v54, %v1499_v42  ;;  %v2012_v45 = vadd.f32 %v6099_v54, %v2011_v43  ;;  %v2375_v50 = vmax.f32 %v1497_v36, 0.0  ;;  %v2503_v51 = vmax.f32 %v2009_v37, 0.0 }
 0x15e   : > { %v2378_v48 = vmax.f32 %v1508_v40, 0.0  ;;  %v2506_v49 = vmax.f32 %v2020_v41, 0.0 }
 0x15f   : > { %v2376_v52 = vmax.f32 %v1500_v44, 0.0  ;;  %v2504_v53 = vmax.f32 %v2012_v45, 0.0 }
 0x160   : > { %v4707_v55 = vpack.c.bf16 %v2378_v48, %v2377_v46  ;;  %v5027_v56 = vpack.c.bf16 %v2506_v49, %v2505_v47 }
 0x161   : > { %v4702_v57 = vpack.c.bf16 %v2376_v52, %v2375_v50  ;;  %v5022_v58 = vpack.c.bf16 %v2504_v53, %v2503_v51  ;;  %v5552_v59 = vpop.f32.mrb[52].mxu0  ;;  %v5680_v60 = vpop.f32.mrb[52].mxu1 }
 0x162   : > { %5243 = vst [vmem:[%s6118_s13 + $0xc8] sm:$0xff] %v4707_v55   ;;  %5307 = vst [vmem:[%s6118_s13 + $0x2c8] sm:$0xff] %v5027_v56   ;;  %v1521_v61 = vadd.f32 %v5552_v59, %v6099_v54  ;;  %v2033_v62 = vadd.f32 %v5680_v60, %v6099_v54  ;;  %v1512_v63 = vpop.f32.mrb[53].mxu0  ;;  %v2024_v0 = vpop.f32.mrb[53].mxu1 }
 0x163   : > { %5242 = vst [vmem:[%s6118_s13 + $0xc0] sm:$0xff] %v4702_v57   ;;  %5306 = vst [vmem:[%s6118_s13 + $0x2c0] sm:$0xff] %v5022_v58   ;;  %v1513_v1 = vadd.f32 %v6099_v54, %v1512_v63  ;;  %v2025_v2 = vadd.f32 %v6099_v54, %v2024_v0  ;;  %v5553_v3 = vpop.f32.mrb[54].mxu0  ;;  %v5681_v4 = vpop.f32.mrb[54].mxu1 }
 0x164   : > { %v1524_v5 = vadd.f32 %v5553_v3, %v6099_v54  ;;  %v2036_v6 = vadd.f32 %v5681_v4, %v6099_v54  ;;  %v1515_v7 = vpop.f32.mrb[55].mxu0  ;;  %v2027_v8 = vpop.f32.mrb[55].mxu1  ;;  %v2381_v11 = vmax.f32 %v1521_v61, 0.0  ;;  %v2509_v12 = vmax.f32 %v2033_v62, 0.0 }
 0x165   : > { %v1516_v9 = vadd.f32 %v6099_v54, %v1515_v7  ;;  %v2028_v10 = vadd.f32 %v6099_v54, %v2027_v8  ;;  %v2379_v15 = vmax.f32 %v1513_v1, 0.0  ;;  %v2507_v16 = vmax.f32 %v2025_v2, 0.0 }
 0x166   : > { %v2382_v13 = vmax.f32 %v1524_v5, 0.0  ;;  %v2510_v14 = vmax.f32 %v2036_v6, 0.0 }
 0x167   : > { %v2380_v17 = vmax.f32 %v1516_v9, 0.0  ;;  %v2508_v18 = vmax.f32 %v2028_v10, 0.0 }
 0x168   : > { %v4717_v19 = vpack.c.bf16 %v2382_v13, %v2381_v11  ;;  %v5037_v20 = vpack.c.bf16 %v2510_v14, %v2509_v12 }
 0x169   : > { %v4712_v21 = vpack.c.bf16 %v2380_v17, %v2379_v15  ;;  %v5032_v22 = vpack.c.bf16 %v2508_v18, %v2507_v16  ;;  %v5556_v23 = vpop.f32.mrb[56].mxu0  ;;  %v5684_v24 = vpop.f32.mrb[56].mxu1 }
 0x16a   : > { %5245 = vst [vmem:[%s6118_s13 + $0xd8] sm:$0xff] %v4717_v19   ;;  %5309 = vst [vmem:[%s6118_s13 + $0x2d8] sm:$0xff] %v5037_v20   ;;  %v1537_v25 = vadd.f32 %v5556_v23, %v6099_v54  ;;  %v2049_v26 = vadd.f32 %v5684_v24, %v6099_v54  ;;  %v1528_v27 = vpop.f32.mrb[57].mxu0  ;;  %v2040_v28 = vpop.f32.mrb[57].mxu1 }
 0x16b   : > { %5244 = vst [vmem:[%s6118_s13 + $0xd0] sm:$0xff] %v4712_v21   ;;  %5308 = vst [vmem:[%s6118_s13 + $0x2d0] sm:$0xff] %v5032_v22   ;;  %v1529_v29 = vadd.f32 %v6099_v54, %v1528_v27  ;;  %v2041_v30 = vadd.f32 %v6099_v54, %v2040_v28  ;;  %v5557_v31 = vpop.f32.mrb[58].mxu0  ;;  %v5685_v32 = vpop.f32.mrb[58].mxu1 }
 0x16c   : > { %v1540_v33 = vadd.f32 %v5557_v31, %v6099_v54  ;;  %v2052_v34 = vadd.f32 %v5685_v32, %v6099_v54  ;;  %v1531_v35 = vpop.f32.mrb[59].mxu0  ;;  %v2043_v36 = vpop.f32.mrb[59].mxu1  ;;  %v2385_v39 = vmax.f32 %v1537_v25, 0.0  ;;  %v2513_v40 = vmax.f32 %v2049_v26, 0.0 }
 0x16d   : > { %v1532_v37 = vadd.f32 %v6099_v54, %v1531_v35  ;;  %v2044_v38 = vadd.f32 %v6099_v54, %v2043_v36  ;;  %v2383_v43 = vmax.f32 %v1529_v29, 0.0  ;;  %v2511_v44 = vmax.f32 %v2041_v30, 0.0  ;;  %v6307_v54 = vld [vmem:[%s6515_s2] ss:$0 sm:$0xff] }
 0x16e   : > { %v2386_v41 = vmax.f32 %v1540_v33, 0.0  ;;  %v2514_v42 = vmax.f32 %v2052_v34, 0.0 }
 0x16f   : > { %v2384_v45 = vmax.f32 %v1532_v37, 0.0  ;;  %v2512_v46 = vmax.f32 %v2044_v38, 0.0 }
 0x170   : > { %v4727_v47 = vpack.c.bf16 %v2386_v41, %v2385_v39  ;;  %v5047_v48 = vpack.c.bf16 %v2514_v42, %v2513_v40 }
 0x171   : > { %v4722_v49 = vpack.c.bf16 %v2384_v45, %v2383_v43  ;;  %v5042_v50 = vpack.c.bf16 %v2512_v46, %v2511_v44  ;;  %v5560_v51 = vpop.f32.mrb[60].mxu0  ;;  %v5688_v52 = vpop.f32.mrb[60].mxu1 }
 0x172   : > { %5247 = vst [vmem:[%s6118_s13 + $0xe8] sm:$0xff] %v4727_v47   ;;  %5311 = vst [vmem:[%s6118_s13 + $0x2e8] sm:$0xff] %v5047_v48   ;;  %v1553_v53 = vadd.f32 %v6307_v54, %v5560_v51  ;;  %v2065_v55 = vadd.f32 %v6307_v54, %v5688_v52  ;;  %v1544_v56 = vpop.f32.mrb[61].mxu0  ;;  %v2056_v57 = vpop.f32.mrb[61].mxu1 }
 0x173   : > { %5246 = vst [vmem:[%s6118_s13 + $0xe0] sm:$0xff] %v4722_v49   ;;  %5310 = vst [vmem:[%s6118_s13 + $0x2e0] sm:$0xff] %v5042_v50   ;;  %v1545_v58 = vadd.f32 %v6307_v54, %v1544_v56  ;;  %v2057_v59 = vadd.f32 %v6307_v54, %v2056_v57  ;;  %v5561_v60 = vpop.f32.mrb[62].mxu0  ;;  %v5689_v61 = vpop.f32.mrb[62].mxu1 }
 0x174   : > { %v1556_v62 = vadd.f32 %v6307_v54, %v5561_v60  ;;  %v2068_v63 = vadd.f32 %v6307_v54, %v5689_v61  ;;  %v1547_v0 = vpop.f32.mrb[63].mxu0  ;;  %v2059_v1 = vpop.f32.mrb[63].mxu1  ;;  %v2389_v4 = vmax.f32 %v1553_v53, 0.0  ;;  %v2517_v5 = vmax.f32 %v2065_v55, 0.0 }
 0x175   : > { %v1548_v2 = vadd.f32 %v6307_v54, %v1547_v0  ;;  %v2060_v3 = vadd.f32 %v6307_v54, %v2059_v1  ;;  %v2387_v8 = vmax.f32 %v1545_v58, 0.0  ;;  %v2515_v9 = vmax.f32 %v2057_v59, 0.0 }
 0x176   : > { %v2390_v6 = vmax.f32 %v1556_v62, 0.0  ;;  %v2518_v7 = vmax.f32 %v2068_v63, 0.0 }
 0x177   : > { %v2388_v10 = vmax.f32 %v1548_v2, 0.0  ;;  %v2516_v11 = vmax.f32 %v2060_v3, 0.0 }
 0x178   : > { %v4737_v12 = vpack.c.bf16 %v2390_v6, %v2389_v4  ;;  %v5057_v13 = vpack.c.bf16 %v2518_v7, %v2517_v5 }
 0x179   : > { %v4732_v14 = vpack.c.bf16 %v2388_v10, %v2387_v8  ;;  %v5052_v15 = vpack.c.bf16 %v2516_v11, %v2515_v9  ;;  %v5564_v16 = vpop.f32.mrb[64].mxu0  ;;  %v5692_v17 = vpop.f32.mrb[64].mxu1 }
 0x17a   : > { %5249 = vst [vmem:[%s6118_s13 + $0xf8] sm:$0xff] %v4737_v12   ;;  %5313 = vst [vmem:[%s6118_s13 + $0x2f8] sm:$0xff] %v5057_v13   ;;  %v1569_v18 = vadd.f32 %v6307_v54, %v5564_v16  ;;  %v2081_v19 = vadd.f32 %v6307_v54, %v5692_v17  ;;  %v1560_v20 = vpop.f32.mrb[65].mxu0  ;;  %v2072_v21 = vpop.f32.mrb[65].mxu1 }
 0x17b   : > { %5248 = vst [vmem:[%s6118_s13 + $0xf0] sm:$0xff] %v4732_v14   ;;  %5312 = vst [vmem:[%s6118_s13 + $0x2f0] sm:$0xff] %v5052_v15   ;;  %v1561_v22 = vadd.f32 %v6307_v54, %v1560_v20  ;;  %v2073_v23 = vadd.f32 %v6307_v54, %v2072_v21  ;;  %v5565_v24 = vpop.f32.mrb[66].mxu0  ;;  %v5693_v25 = vpop.f32.mrb[66].mxu1 }
 0x17c   : > { %v1572_v26 = vadd.f32 %v6307_v54, %v5565_v24  ;;  %v2084_v27 = vadd.f32 %v6307_v54, %v5693_v25  ;;  %v1563_v28 = vpop.f32.mrb[67].mxu0  ;;  %v2075_v29 = vpop.f32.mrb[67].mxu1  ;;  %v2393_v32 = vmax.f32 %v1569_v18, 0.0  ;;  %v2521_v33 = vmax.f32 %v2081_v19, 0.0 }
 0x17d   : > { %v1564_v30 = vadd.f32 %v6307_v54, %v1563_v28  ;;  %v2076_v31 = vadd.f32 %v6307_v54, %v2075_v29  ;;  %v2391_v36 = vmax.f32 %v1561_v22, 0.0  ;;  %v2519_v37 = vmax.f32 %v2073_v23, 0.0 }
 0x17e   : > { %v2394_v34 = vmax.f32 %v1572_v26, 0.0  ;;  %v2522_v35 = vmax.f32 %v2084_v27, 0.0 }
 0x17f   : > { %v2392_v38 = vmax.f32 %v1564_v30, 0.0  ;;  %v2520_v39 = vmax.f32 %v2076_v31, 0.0 }
 0x180   : > { %v4747_v40 = vpack.c.bf16 %v2394_v34, %v2393_v32  ;;  %v5067_v41 = vpack.c.bf16 %v2522_v35, %v2521_v33 }
 0x181   : > { %v4742_v42 = vpack.c.bf16 %v2392_v38, %v2391_v36  ;;  %v5062_v43 = vpack.c.bf16 %v2520_v39, %v2519_v37  ;;  %v5568_v44 = vpop.f32.mrb[68].mxu0  ;;  %v5696_v45 = vpop.f32.mrb[68].mxu1 }
 0x182   : > { %5251 = vst [vmem:[%s6118_s13 + $0x108] sm:$0xff] %v4747_v40   ;;  %5315 = vst [vmem:[%s6118_s13 + $0x308] sm:$0xff] %v5067_v41   ;;  %v1585_v46 = vadd.f32 %v6307_v54, %v5568_v44  ;;  %v2097_v47 = vadd.f32 %v6307_v54, %v5696_v45  ;;  %v1576_v48 = vpop.f32.mrb[69].mxu0  ;;  %v2088_v49 = vpop.f32.mrb[69].mxu1 }
 0x183   : > { %5250 = vst [vmem:[%s6118_s13 + $0x100] sm:$0xff] %v4742_v42   ;;  %5314 = vst [vmem:[%s6118_s13 + $0x300] sm:$0xff] %v5062_v43   ;;  %v1577_v50 = vadd.f32 %v6307_v54, %v1576_v48  ;;  %v2089_v51 = vadd.f32 %v6307_v54, %v2088_v49  ;;  %v5569_v52 = vpop.f32.mrb[70].mxu0  ;;  %v5697_v53 = vpop.f32.mrb[70].mxu1 }
 0x184   : > { %v1588_v55 = vadd.f32 %v6307_v54, %v5569_v52  ;;  %v2100_v56 = vadd.f32 %v6307_v54, %v5697_v53  ;;  %v1579_v57 = vpop.f32.mrb[71].mxu0  ;;  %v2091_v58 = vpop.f32.mrb[71].mxu1  ;;  %v2397_v61 = vmax.f32 %v1585_v46, 0.0  ;;  %v2525_v62 = vmax.f32 %v2097_v47, 0.0 }
 0x185   : > { %v1580_v59 = vadd.f32 %v6307_v54, %v1579_v57  ;;  %v2092_v60 = vadd.f32 %v6307_v54, %v2091_v58  ;;  %v2395_v1 = vmax.f32 %v1577_v50, 0.0  ;;  %v2523_v2 = vmax.f32 %v2089_v51, 0.0 }
 0x186   : > { %v2398_v63 = vmax.f32 %v1588_v55, 0.0  ;;  %v2526_v0 = vmax.f32 %v2100_v56, 0.0 }
 0x187   : > { %v2396_v3 = vmax.f32 %v1580_v59, 0.0  ;;  %v2524_v4 = vmax.f32 %v2092_v60, 0.0 }
 0x188   : > { %v4757_v5 = vpack.c.bf16 %v2398_v63, %v2397_v61  ;;  %v5077_v6 = vpack.c.bf16 %v2526_v0, %v2525_v62 }
 0x189   : > { %v4752_v7 = vpack.c.bf16 %v2396_v3, %v2395_v1  ;;  %v5072_v8 = vpack.c.bf16 %v2524_v4, %v2523_v2  ;;  %v5572_v9 = vpop.f32.mrb[72].mxu0  ;;  %v5700_v10 = vpop.f32.mrb[72].mxu1 }
 0x18a   : > { %5253 = vst [vmem:[%s6118_s13 + $0x118] sm:$0xff] %v4757_v5   ;;  %5317 = vst [vmem:[%s6118_s13 + $0x318] sm:$0xff] %v5077_v6   ;;  %v1601_v11 = vadd.f32 %v6307_v54, %v5572_v9  ;;  %v2113_v12 = vadd.f32 %v6307_v54, %v5700_v10  ;;  %v1592_v13 = vpop.f32.mrb[73].mxu0  ;;  %v2104_v14 = vpop.f32.mrb[73].mxu1 }
 0x18b   : > { %5252 = vst [vmem:[%s6118_s13 + $0x110] sm:$0xff] %v4752_v7   ;;  %5316 = vst [vmem:[%s6118_s13 + $0x310] sm:$0xff] %v5072_v8   ;;  %v1593_v15 = vadd.f32 %v6307_v54, %v1592_v13  ;;  %v2105_v16 = vadd.f32 %v6307_v54, %v2104_v14  ;;  %v5573_v17 = vpop.f32.mrb[74].mxu0  ;;  %v5701_v18 = vpop.f32.mrb[74].mxu1 }
 0x18c   : > { %v1604_v19 = vadd.f32 %v6307_v54, %v5573_v17  ;;  %v2116_v20 = vadd.f32 %v6307_v54, %v5701_v18  ;;  %v1595_v21 = vpop.f32.mrb[75].mxu0  ;;  %v2107_v22 = vpop.f32.mrb[75].mxu1  ;;  %v2401_v25 = vmax.f32 %v1601_v11, 0.0  ;;  %v2529_v26 = vmax.f32 %v2113_v12, 0.0 }
 0x18d   : > { %v1596_v23 = vadd.f32 %v6307_v54, %v1595_v21  ;;  %v2108_v24 = vadd.f32 %v6307_v54, %v2107_v22  ;;  %v2399_v29 = vmax.f32 %v1593_v15, 0.0  ;;  %v2527_v30 = vmax.f32 %v2105_v16, 0.0 }
 0x18e   : > { %v2402_v27 = vmax.f32 %v1604_v19, 0.0  ;;  %v2530_v28 = vmax.f32 %v2116_v20, 0.0 }
 0x18f   : > { %v2400_v31 = vmax.f32 %v1596_v23, 0.0  ;;  %v2528_v32 = vmax.f32 %v2108_v24, 0.0 }
 0x190   : > { %v4767_v33 = vpack.c.bf16 %v2402_v27, %v2401_v25  ;;  %v5087_v34 = vpack.c.bf16 %v2530_v28, %v2529_v26 }
 0x191   : > { %v4762_v35 = vpack.c.bf16 %v2400_v31, %v2399_v29  ;;  %v5082_v36 = vpack.c.bf16 %v2528_v32, %v2527_v30  ;;  %v5576_v37 = vpop.f32.mrb[76].mxu0  ;;  %v5704_v38 = vpop.f32.mrb[76].mxu1 }
 0x192   : > { %5255 = vst [vmem:[%s6118_s13 + $0x128] sm:$0xff] %v4767_v33   ;;  %5319 = vst [vmem:[%s6118_s13 + $0x328] sm:$0xff] %v5087_v34   ;;  %v1617_v39 = vadd.f32 %v6307_v54, %v5576_v37  ;;  %v2129_v40 = vadd.f32 %v6307_v54, %v5704_v38  ;;  %v1608_v41 = vpop.f32.mrb[77].mxu0  ;;  %v2120_v42 = vpop.f32.mrb[77].mxu1 }
 0x193   : > { %5254 = vst [vmem:[%s6118_s13 + $0x120] sm:$0xff] %v4762_v35   ;;  %5318 = vst [vmem:[%s6118_s13 + $0x320] sm:$0xff] %v5082_v36   ;;  %v1609_v43 = vadd.f32 %v6307_v54, %v1608_v41  ;;  %v2121_v44 = vadd.f32 %v6307_v54, %v2120_v42  ;;  %v5577_v45 = vpop.f32.mrb[78].mxu0  ;;  %v5705_v46 = vpop.f32.mrb[78].mxu1 }
 0x194   : > { %v1620_v47 = vadd.f32 %v6307_v54, %v5577_v45  ;;  %v2132_v48 = vadd.f32 %v6307_v54, %v5705_v46  ;;  %v1611_v49 = vpop.f32.mrb[79].mxu0  ;;  %v2123_v50 = vpop.f32.mrb[79].mxu1  ;;  %v2405_v53 = vmax.f32 %v1617_v39, 0.0  ;;  %v2533_v55 = vmax.f32 %v2129_v40, 0.0 }
 0x195   : > { %v1612_v51 = vadd.f32 %v6307_v54, %v1611_v49  ;;  %v2124_v52 = vadd.f32 %v6307_v54, %v2123_v50  ;;  %v2403_v58 = vmax.f32 %v1609_v43, 0.0  ;;  %v2531_v59 = vmax.f32 %v2121_v44, 0.0 }
 0x196   : > { %v2406_v56 = vmax.f32 %v1620_v47, 0.0  ;;  %v2534_v57 = vmax.f32 %v2132_v48, 0.0 }
 0x197   : > { %v2404_v60 = vmax.f32 %v1612_v51, 0.0  ;;  %v2532_v61 = vmax.f32 %v2124_v52, 0.0 }
 0x198   : > { %v4777_v62 = vpack.c.bf16 %v2406_v56, %v2405_v53  ;;  %v5097_v63 = vpack.c.bf16 %v2534_v57, %v2533_v55 }
 0x199   : > { %v4772_v0 = vpack.c.bf16 %v2404_v60, %v2403_v58  ;;  %v5092_v1 = vpack.c.bf16 %v2532_v61, %v2531_v59  ;;  %v5580_v2 = vpop.f32.mrb[80].mxu0  ;;  %v5708_v3 = vpop.f32.mrb[80].mxu1 }
 0x19a   : > { %5257 = vst [vmem:[%s6118_s13 + $0x138] sm:$0xff] %v4777_v62   ;;  %5321 = vst [vmem:[%s6118_s13 + $0x338] sm:$0xff] %v5097_v63   ;;  %v1633_v4 = vadd.f32 %v6307_v54, %v5580_v2  ;;  %v2145_v5 = vadd.f32 %v6307_v54, %v5708_v3  ;;  %v1624_v6 = vpop.f32.mrb[81].mxu0  ;;  %v2136_v7 = vpop.f32.mrb[81].mxu1 }
 0x19b   : > { %5256 = vst [vmem:[%s6118_s13 + $0x130] sm:$0xff] %v4772_v0   ;;  %5320 = vst [vmem:[%s6118_s13 + $0x330] sm:$0xff] %v5092_v1   ;;  %v1625_v8 = vadd.f32 %v6307_v54, %v1624_v6  ;;  %v2137_v9 = vadd.f32 %v6307_v54, %v2136_v7  ;;  %v5581_v10 = vpop.f32.mrb[82].mxu0  ;;  %v5709_v11 = vpop.f32.mrb[82].mxu1 }
 0x19c   : > { %v1636_v12 = vadd.f32 %v6307_v54, %v5581_v10  ;;  %v2148_v13 = vadd.f32 %v6307_v54, %v5709_v11  ;;  %v1627_v14 = vpop.f32.mrb[83].mxu0  ;;  %v2139_v15 = vpop.f32.mrb[83].mxu1  ;;  %v2409_v18 = vmax.f32 %v1633_v4, 0.0  ;;  %v2537_v19 = vmax.f32 %v2145_v5, 0.0 }
 0x19d   : > { %v1628_v16 = vadd.f32 %v6307_v54, %v1627_v14  ;;  %v2140_v17 = vadd.f32 %v6307_v54, %v2139_v15  ;;  %v2407_v22 = vmax.f32 %v1625_v8, 0.0  ;;  %v2535_v23 = vmax.f32 %v2137_v9, 0.0 }
 0x19e   : > { %v2410_v20 = vmax.f32 %v1636_v12, 0.0  ;;  %v2538_v21 = vmax.f32 %v2148_v13, 0.0 }
 0x19f   : > { %v2408_v24 = vmax.f32 %v1628_v16, 0.0  ;;  %v2536_v25 = vmax.f32 %v2140_v17, 0.0 }
 0x1a0   : > { %v4787_v26 = vpack.c.bf16 %v2410_v20, %v2409_v18  ;;  %v5107_v27 = vpack.c.bf16 %v2538_v21, %v2537_v19 }
 0x1a1   : > { %v4782_v28 = vpack.c.bf16 %v2408_v24, %v2407_v22  ;;  %v5102_v29 = vpack.c.bf16 %v2536_v25, %v2535_v23  ;;  %v5584_v30 = vpop.f32.mrb[84].mxu0  ;;  %v5712_v31 = vpop.f32.mrb[84].mxu1 }
 0x1a2   : > { %5259 = vst [vmem:[%s6118_s13 + $0x148] sm:$0xff] %v4787_v26   ;;  %5323 = vst [vmem:[%s6118_s13 + $0x348] sm:$0xff] %v5107_v27   ;;  %v1649_v32 = vadd.f32 %v6307_v54, %v5584_v30  ;;  %v2161_v33 = vadd.f32 %v6307_v54, %v5712_v31  ;;  %v1640_v34 = vpop.f32.mrb[85].mxu0  ;;  %v2152_v35 = vpop.f32.mrb[85].mxu1 }
 0x1a3   : > { %5258 = vst [vmem:[%s6118_s13 + $0x140] sm:$0xff] %v4782_v28   ;;  %5322 = vst [vmem:[%s6118_s13 + $0x340] sm:$0xff] %v5102_v29   ;;  %v1641_v36 = vadd.f32 %v6307_v54, %v1640_v34  ;;  %v2153_v37 = vadd.f32 %v6307_v54, %v2152_v35  ;;  %v5585_v38 = vpop.f32.mrb[86].mxu0  ;;  %v5713_v39 = vpop.f32.mrb[86].mxu1 }
 0x1a4   : > { %v1652_v40 = vadd.f32 %v6307_v54, %v5585_v38  ;;  %v2164_v41 = vadd.f32 %v6307_v54, %v5713_v39  ;;  %v1643_v42 = vpop.f32.mrb[87].mxu0  ;;  %v2155_v43 = vpop.f32.mrb[87].mxu1  ;;  %v2413_v46 = vmax.f32 %v1649_v32, 0.0  ;;  %v2541_v47 = vmax.f32 %v2161_v33, 0.0 }
 0x1a5   : > { %v1644_v44 = vadd.f32 %v6307_v54, %v1643_v42  ;;  %v2156_v45 = vadd.f32 %v6307_v54, %v2155_v43  ;;  %v2411_v50 = vmax.f32 %v1641_v36, 0.0  ;;  %v2539_v51 = vmax.f32 %v2153_v37, 0.0 }
 0x1a6   : > { %v2414_v48 = vmax.f32 %v1652_v40, 0.0  ;;  %v2542_v49 = vmax.f32 %v2164_v41, 0.0 }
 0x1a7   : > { %v2412_v52 = vmax.f32 %v1644_v44, 0.0  ;;  %v2540_v53 = vmax.f32 %v2156_v45, 0.0 }
 0x1a8   : > { %v4797_v55 = vpack.c.bf16 %v2414_v48, %v2413_v46  ;;  %v5117_v56 = vpack.c.bf16 %v2542_v49, %v2541_v47 }
 0x1a9   : > { %v4792_v57 = vpack.c.bf16 %v2412_v52, %v2411_v50  ;;  %v5112_v58 = vpack.c.bf16 %v2540_v53, %v2539_v51  ;;  %v5588_v59 = vpop.f32.mrb[88].mxu0  ;;  %v5716_v60 = vpop.f32.mrb[88].mxu1 }
 0x1aa   : > { %5261 = vst [vmem:[%s6118_s13 + $0x158] sm:$0xff] %v4797_v55   ;;  %5325 = vst [vmem:[%s6118_s13 + $0x358] sm:$0xff] %v5117_v56   ;;  %v1665_v61 = vadd.f32 %v6307_v54, %v5588_v59  ;;  %v2177_v62 = vadd.f32 %v6307_v54, %v5716_v60  ;;  %v1656_v63 = vpop.f32.mrb[89].mxu0  ;;  %v2168_v0 = vpop.f32.mrb[89].mxu1 }
 0x1ab   : > { %5260 = vst [vmem:[%s6118_s13 + $0x150] sm:$0xff] %v4792_v57   ;;  %5324 = vst [vmem:[%s6118_s13 + $0x350] sm:$0xff] %v5112_v58   ;;  %v1657_v1 = vadd.f32 %v6307_v54, %v1656_v63  ;;  %v2169_v2 = vadd.f32 %v6307_v54, %v2168_v0  ;;  %v5589_v3 = vpop.f32.mrb[90].mxu0  ;;  %v5717_v4 = vpop.f32.mrb[90].mxu1 }
 0x1ac   : > { %v1668_v5 = vadd.f32 %v6307_v54, %v5589_v3  ;;  %v2180_v6 = vadd.f32 %v6307_v54, %v5717_v4  ;;  %v1659_v7 = vpop.f32.mrb[91].mxu0  ;;  %v2171_v8 = vpop.f32.mrb[91].mxu1  ;;  %v2417_v11 = vmax.f32 %v1665_v61, 0.0  ;;  %v2545_v12 = vmax.f32 %v2177_v62, 0.0 }
 0x1ad   : > { %v1660_v9 = vadd.f32 %v6307_v54, %v1659_v7  ;;  %v2172_v10 = vadd.f32 %v6307_v54, %v2171_v8  ;;  %v2415_v15 = vmax.f32 %v1657_v1, 0.0  ;;  %v2543_v16 = vmax.f32 %v2169_v2, 0.0 }
 0x1ae   : > { %v2418_v13 = vmax.f32 %v1668_v5, 0.0  ;;  %v2546_v14 = vmax.f32 %v2180_v6, 0.0 }
 0x1af   : > { %v2416_v17 = vmax.f32 %v1660_v9, 0.0  ;;  %v2544_v18 = vmax.f32 %v2172_v10, 0.0 }
 0x1b0   : > { %v4807_v19 = vpack.c.bf16 %v2418_v13, %v2417_v11  ;;  %v5127_v20 = vpack.c.bf16 %v2546_v14, %v2545_v12 }
 0x1b1   : > { %v4802_v21 = vpack.c.bf16 %v2416_v17, %v2415_v15  ;;  %v5122_v22 = vpack.c.bf16 %v2544_v18, %v2543_v16  ;;  %v5592_v23 = vpop.f32.mrb[92].mxu0  ;;  %v5720_v24 = vpop.f32.mrb[92].mxu1 }
 0x1b2   : > { %5263 = vst [vmem:[%s6118_s13 + $0x168] sm:$0xff] %v4807_v19   ;;  %5327 = vst [vmem:[%s6118_s13 + $0x368] sm:$0xff] %v5127_v20   ;;  %v1681_v25 = vadd.f32 %v6307_v54, %v5592_v23  ;;  %v2193_v26 = vadd.f32 %v6307_v54, %v5720_v24  ;;  %v1672_v27 = vpop.f32.mrb[93].mxu0  ;;  %v2184_v28 = vpop.f32.mrb[93].mxu1 }
 0x1b3   : > { %5262 = vst [vmem:[%s6118_s13 + $0x160] sm:$0xff] %v4802_v21   ;;  %5326 = vst [vmem:[%s6118_s13 + $0x360] sm:$0xff] %v5122_v22   ;;  %v1673_v29 = vadd.f32 %v6307_v54, %v1672_v27  ;;  %v2185_v30 = vadd.f32 %v6307_v54, %v2184_v28  ;;  %v5593_v31 = vpop.f32.mrb[94].mxu0  ;;  %v5721_v32 = vpop.f32.mrb[94].mxu1 }
 0x1b4   : > { %v1684_v33 = vadd.f32 %v6307_v54, %v5593_v31  ;;  %v2196_v34 = vadd.f32 %v6307_v54, %v5721_v32  ;;  %v1675_v35 = vpop.f32.mrb[95].mxu0  ;;  %v2187_v36 = vpop.f32.mrb[95].mxu1  ;;  %v2421_v39 = vmax.f32 %v1681_v25, 0.0  ;;  %v2549_v40 = vmax.f32 %v2193_v26, 0.0 }
 0x1b5   : > { %v1676_v37 = vadd.f32 %v6307_v54, %v1675_v35  ;;  %v2188_v38 = vadd.f32 %v6307_v54, %v2187_v36  ;;  %v2419_v43 = vmax.f32 %v1673_v29, 0.0  ;;  %v2547_v44 = vmax.f32 %v2185_v30, 0.0 }
 0x1b6   : > { %v2422_v41 = vmax.f32 %v1684_v33, 0.0  ;;  %v2550_v42 = vmax.f32 %v2196_v34, 0.0 }
 0x1b7   : > { %v2420_v45 = vmax.f32 %v1676_v37, 0.0  ;;  %v2548_v46 = vmax.f32 %v2188_v38, 0.0 }
 0x1b8   : > { %v4817_v47 = vpack.c.bf16 %v2422_v41, %v2421_v39  ;;  %v5137_v48 = vpack.c.bf16 %v2550_v42, %v2549_v40 }
 0x1b9   : > { %v4812_v49 = vpack.c.bf16 %v2420_v45, %v2419_v43  ;;  %v5132_v50 = vpack.c.bf16 %v2548_v46, %v2547_v44  ;;  %v5596_v51 = vpop.f32.mrb[96].mxu0  ;;  %v5724_v52 = vpop.f32.mrb[96].mxu1 }
 0x1ba   : > { %5265 = vst [vmem:[%s6118_s13 + $0x178] sm:$0xff] %v4817_v47   ;;  %5329 = vst [vmem:[%s6118_s13 + $0x378] sm:$0xff] %v5137_v48   ;;  %v1697_v53 = vadd.f32 %v6307_v54, %v5596_v51  ;;  %v2209_v55 = vadd.f32 %v6307_v54, %v5724_v52  ;;  %v1688_v56 = vpop.f32.mrb[97].mxu0  ;;  %v2200_v57 = vpop.f32.mrb[97].mxu1 }
 0x1bb   : > { %5264 = vst [vmem:[%s6118_s13 + $0x170] sm:$0xff] %v4812_v49   ;;  %5328 = vst [vmem:[%s6118_s13 + $0x370] sm:$0xff] %v5132_v50   ;;  %v1689_v58 = vadd.f32 %v6307_v54, %v1688_v56  ;;  %v2201_v59 = vadd.f32 %v6307_v54, %v2200_v57  ;;  %v5597_v60 = vpop.f32.mrb[98].mxu0  ;;  %v5725_v61 = vpop.f32.mrb[98].mxu1 }
 0x1bc   : > { %v1700_v62 = vadd.f32 %v6307_v54, %v5597_v60  ;;  %v2212_v63 = vadd.f32 %v6307_v54, %v5725_v61  ;;  %v1691_v0 = vpop.f32.mrb[99].mxu0  ;;  %v2203_v1 = vpop.f32.mrb[99].mxu1  ;;  %v2425_v4 = vmax.f32 %v1697_v53, 0.0  ;;  %v2553_v5 = vmax.f32 %v2209_v55, 0.0 }
 0x1bd   : > { %v1692_v2 = vadd.f32 %v6307_v54, %v1691_v0  ;;  %v2204_v3 = vadd.f32 %v6307_v54, %v2203_v1  ;;  %v2423_v8 = vmax.f32 %v1689_v58, 0.0  ;;  %v2551_v9 = vmax.f32 %v2201_v59, 0.0 }
 0x1be   : > { %v2426_v6 = vmax.f32 %v1700_v62, 0.0  ;;  %v2554_v7 = vmax.f32 %v2212_v63, 0.0 }
 0x1bf   : > { %v2424_v10 = vmax.f32 %v1692_v2, 0.0  ;;  %v2552_v11 = vmax.f32 %v2204_v3, 0.0 }
 0x1c0   : > { %v4827_v12 = vpack.c.bf16 %v2426_v6, %v2425_v4  ;;  %v5147_v13 = vpack.c.bf16 %v2554_v7, %v2553_v5 }
 0x1c1   : > { %v4822_v14 = vpack.c.bf16 %v2424_v10, %v2423_v8  ;;  %v5142_v15 = vpack.c.bf16 %v2552_v11, %v2551_v9  ;;  %v5600_v16 = vpop.f32.mrb[100].mxu0  ;;  %v5728_v17 = vpop.f32.mrb[100].mxu1 }
 0x1c2   : > { %5267 = vst [vmem:[%s6118_s13 + $0x188] sm:$0xff] %v4827_v12   ;;  %5331 = vst [vmem:[%s6118_s13 + $0x388] sm:$0xff] %v5147_v13   ;;  %v1713_v18 = vadd.f32 %v6307_v54, %v5600_v16  ;;  %v2225_v19 = vadd.f32 %v6307_v54, %v5728_v17  ;;  %v1704_v20 = vpop.f32.mrb[101].mxu0  ;;  %v2216_v21 = vpop.f32.mrb[101].mxu1 }
 0x1c3   : > { %5266 = vst [vmem:[%s6118_s13 + $0x180] sm:$0xff] %v4822_v14   ;;  %5330 = vst [vmem:[%s6118_s13 + $0x380] sm:$0xff] %v5142_v15   ;;  %v1705_v22 = vadd.f32 %v6307_v54, %v1704_v20  ;;  %v2217_v23 = vadd.f32 %v6307_v54, %v2216_v21  ;;  %v5601_v24 = vpop.f32.mrb[102].mxu0  ;;  %v5729_v25 = vpop.f32.mrb[102].mxu1 }
 0x1c4   : > { %v1716_v26 = vadd.f32 %v6307_v54, %v5601_v24  ;;  %v2228_v27 = vadd.f32 %v6307_v54, %v5729_v25  ;;  %v1707_v28 = vpop.f32.mrb[103].mxu0  ;;  %v2219_v29 = vpop.f32.mrb[103].mxu1  ;;  %v2429_v32 = vmax.f32 %v1713_v18, 0.0  ;;  %v2557_v33 = vmax.f32 %v2225_v19, 0.0 }
 0x1c5   : > { %v1708_v30 = vadd.f32 %v6307_v54, %v1707_v28  ;;  %v2220_v31 = vadd.f32 %v6307_v54, %v2219_v29  ;;  %v2427_v36 = vmax.f32 %v1705_v22, 0.0  ;;  %v2555_v37 = vmax.f32 %v2217_v23, 0.0 }
 0x1c6   : > { %v2430_v34 = vmax.f32 %v1716_v26, 0.0  ;;  %v2558_v35 = vmax.f32 %v2228_v27, 0.0 }
 0x1c7   : > { %v2428_v38 = vmax.f32 %v1708_v30, 0.0  ;;  %v2556_v39 = vmax.f32 %v2220_v31, 0.0 }
 0x1c8   : > { %v4837_v40 = vpack.c.bf16 %v2430_v34, %v2429_v32  ;;  %v5157_v41 = vpack.c.bf16 %v2558_v35, %v2557_v33 }
 0x1c9   : > { %v4832_v42 = vpack.c.bf16 %v2428_v38, %v2427_v36  ;;  %v5152_v43 = vpack.c.bf16 %v2556_v39, %v2555_v37  ;;  %v5604_v44 = vpop.f32.mrb[104].mxu0  ;;  %v5732_v45 = vpop.f32.mrb[104].mxu1 }
 0x1ca   : > { %5269 = vst [vmem:[%s6118_s13 + $0x198] sm:$0xff] %v4837_v40   ;;  %5333 = vst [vmem:[%s6118_s13 + $0x398] sm:$0xff] %v5157_v41   ;;  %v1729_v46 = vadd.f32 %v6307_v54, %v5604_v44  ;;  %v2241_v47 = vadd.f32 %v6307_v54, %v5732_v45  ;;  %v1720_v48 = vpop.f32.mrb[105].mxu0  ;;  %v2232_v49 = vpop.f32.mrb[105].mxu1 }
 0x1cb   : > { %5268 = vst [vmem:[%s6118_s13 + $0x190] sm:$0xff] %v4832_v42   ;;  %5332 = vst [vmem:[%s6118_s13 + $0x390] sm:$0xff] %v5152_v43   ;;  %v1721_v50 = vadd.f32 %v6307_v54, %v1720_v48  ;;  %v2233_v51 = vadd.f32 %v6307_v54, %v2232_v49  ;;  %v5605_v52 = vpop.f32.mrb[106].mxu0  ;;  %v5733_v53 = vpop.f32.mrb[106].mxu1 }
 0x1cc   : > { %v1732_v55 = vadd.f32 %v6307_v54, %v5605_v52  ;;  %v2244_v56 = vadd.f32 %v6307_v54, %v5733_v53  ;;  %v1723_v57 = vpop.f32.mrb[107].mxu0  ;;  %v2235_v58 = vpop.f32.mrb[107].mxu1  ;;  %v2433_v61 = vmax.f32 %v1729_v46, 0.0  ;;  %v2561_v62 = vmax.f32 %v2241_v47, 0.0 }
 0x1cd   : > { %v1724_v59 = vadd.f32 %v6307_v54, %v1723_v57  ;;  %v2236_v60 = vadd.f32 %v6307_v54, %v2235_v58  ;;  %v2431_v1 = vmax.f32 %v1721_v50, 0.0  ;;  %v2559_v2 = vmax.f32 %v2233_v51, 0.0 }
 0x1ce   : > { %v2434_v63 = vmax.f32 %v1732_v55, 0.0  ;;  %v2562_v0 = vmax.f32 %v2244_v56, 0.0 }
 0x1cf   : > { %v2432_v3 = vmax.f32 %v1724_v59, 0.0  ;;  %v2560_v4 = vmax.f32 %v2236_v60, 0.0 }
 0x1d0   : > { %v4847_v5 = vpack.c.bf16 %v2434_v63, %v2433_v61  ;;  %v5167_v6 = vpack.c.bf16 %v2562_v0, %v2561_v62 }
 0x1d1   : > { %v4842_v7 = vpack.c.bf16 %v2432_v3, %v2431_v1  ;;  %v5162_v8 = vpack.c.bf16 %v2560_v4, %v2559_v2  ;;  %v5608_v9 = vpop.f32.mrb[108].mxu0  ;;  %v5736_v10 = vpop.f32.mrb[108].mxu1 }
 0x1d2   : > { %5271 = vst [vmem:[%s6118_s13 + $0x1a8] sm:$0xff] %v4847_v5   ;;  %5335 = vst [vmem:[%s6118_s13 + $0x3a8] sm:$0xff] %v5167_v6   ;;  %v1745_v11 = vadd.f32 %v6307_v54, %v5608_v9  ;;  %v2257_v12 = vadd.f32 %v6307_v54, %v5736_v10  ;;  %v1736_v13 = vpop.f32.mrb[109].mxu0  ;;  %v2248_v14 = vpop.f32.mrb[109].mxu1 }
 0x1d3   : > { %5270 = vst [vmem:[%s6118_s13 + $0x1a0] sm:$0xff] %v4842_v7   ;;  %5334 = vst [vmem:[%s6118_s13 + $0x3a0] sm:$0xff] %v5162_v8   ;;  %v1737_v15 = vadd.f32 %v6307_v54, %v1736_v13  ;;  %v2249_v16 = vadd.f32 %v6307_v54, %v2248_v14  ;;  %v5609_v17 = vpop.f32.mrb[110].mxu0  ;;  %v5737_v18 = vpop.f32.mrb[110].mxu1 }
 0x1d4   : > { %v1748_v19 = vadd.f32 %v6307_v54, %v5609_v17  ;;  %v2260_v20 = vadd.f32 %v6307_v54, %v5737_v18  ;;  %v1739_v21 = vpop.f32.mrb[111].mxu0  ;;  %v2251_v22 = vpop.f32.mrb[111].mxu1  ;;  %v2437_v25 = vmax.f32 %v1745_v11, 0.0  ;;  %v2565_v26 = vmax.f32 %v2257_v12, 0.0 }
 0x1d5   : > { %v1740_v23 = vadd.f32 %v6307_v54, %v1739_v21  ;;  %v2252_v24 = vadd.f32 %v6307_v54, %v2251_v22  ;;  %v2435_v29 = vmax.f32 %v1737_v15, 0.0  ;;  %v2563_v30 = vmax.f32 %v2249_v16, 0.0 }
 0x1d6   : > { %v2438_v27 = vmax.f32 %v1748_v19, 0.0  ;;  %v2566_v28 = vmax.f32 %v2260_v20, 0.0 }
 0x1d7   : > { %v2436_v31 = vmax.f32 %v1740_v23, 0.0  ;;  %v2564_v32 = vmax.f32 %v2252_v24, 0.0 }
 0x1d8   : > { %v4857_v33 = vpack.c.bf16 %v2438_v27, %v2437_v25  ;;  %v5177_v34 = vpack.c.bf16 %v2566_v28, %v2565_v26 }
 0x1d9   : > { %v4852_v35 = vpack.c.bf16 %v2436_v31, %v2435_v29  ;;  %v5172_v36 = vpack.c.bf16 %v2564_v32, %v2563_v30  ;;  %v5612_v37 = vpop.f32.mrb[112].mxu0  ;;  %v5740_v38 = vpop.f32.mrb[112].mxu1 }
 0x1da   : > { %5273 = vst [vmem:[%s6118_s13 + $0x1b8] sm:$0xff] %v4857_v33   ;;  %5337 = vst [vmem:[%s6118_s13 + $0x3b8] sm:$0xff] %v5177_v34   ;;  %v1761_v39 = vadd.f32 %v6307_v54, %v5612_v37  ;;  %v2273_v40 = vadd.f32 %v6307_v54, %v5740_v38  ;;  %v1752_v41 = vpop.f32.mrb[113].mxu0  ;;  %v2264_v42 = vpop.f32.mrb[113].mxu1 }
 0x1db   : > { %5272 = vst [vmem:[%s6118_s13 + $0x1b0] sm:$0xff] %v4852_v35   ;;  %5336 = vst [vmem:[%s6118_s13 + $0x3b0] sm:$0xff] %v5172_v36   ;;  %v1753_v43 = vadd.f32 %v6307_v54, %v1752_v41  ;;  %v2265_v44 = vadd.f32 %v6307_v54, %v2264_v42  ;;  %v5613_v45 = vpop.f32.mrb[114].mxu0  ;;  %v5741_v46 = vpop.f32.mrb[114].mxu1 }
 0x1dc   : > { %v1764_v47 = vadd.f32 %v6307_v54, %v5613_v45  ;;  %v2276_v48 = vadd.f32 %v6307_v54, %v5741_v46  ;;  %v1755_v49 = vpop.f32.mrb[115].mxu0  ;;  %v2267_v50 = vpop.f32.mrb[115].mxu1  ;;  %v2441_v53 = vmax.f32 %v1761_v39, 0.0  ;;  %v2569_v55 = vmax.f32 %v2273_v40, 0.0 }
 0x1dd   : > { %v1756_v51 = vadd.f32 %v6307_v54, %v1755_v49  ;;  %v2268_v52 = vadd.f32 %v6307_v54, %v2267_v50  ;;  %v2439_v58 = vmax.f32 %v1753_v43, 0.0  ;;  %v2567_v59 = vmax.f32 %v2265_v44, 0.0 }
 0x1de   : > { %v2442_v56 = vmax.f32 %v1764_v47, 0.0  ;;  %v2570_v57 = vmax.f32 %v2276_v48, 0.0 }
 0x1df   : > { %v2440_v60 = vmax.f32 %v1756_v51, 0.0  ;;  %v2568_v61 = vmax.f32 %v2268_v52, 0.0 }
 0x1e0   : > { %v4867_v62 = vpack.c.bf16 %v2442_v56, %v2441_v53  ;;  %v5187_v63 = vpack.c.bf16 %v2570_v57, %v2569_v55 }
 0x1e1   : > { %v4862_v0 = vpack.c.bf16 %v2440_v60, %v2439_v58  ;;  %v5182_v1 = vpack.c.bf16 %v2568_v61, %v2567_v59  ;;  %v5616_v2 = vpop.f32.mrb[116].mxu0  ;;  %v5744_v3 = vpop.f32.mrb[116].mxu1 }
 0x1e2   : > { %5275 = vst [vmem:[%s6118_s13 + $0x1c8] sm:$0xff] %v4867_v62   ;;  %5339 = vst [vmem:[%s6118_s13 + $0x3c8] sm:$0xff] %v5187_v63   ;;  %v1777_v4 = vadd.f32 %v6307_v54, %v5616_v2  ;;  %v2289_v5 = vadd.f32 %v6307_v54, %v5744_v3  ;;  %v1768_v6 = vpop.f32.mrb[117].mxu0  ;;  %v2280_v7 = vpop.f32.mrb[117].mxu1 }
 0x1e3   : > { %5274 = vst [vmem:[%s6118_s13 + $0x1c0] sm:$0xff] %v4862_v0   ;;  %5338 = vst [vmem:[%s6118_s13 + $0x3c0] sm:$0xff] %v5182_v1   ;;  %v1769_v8 = vadd.f32 %v6307_v54, %v1768_v6  ;;  %v2281_v9 = vadd.f32 %v6307_v54, %v2280_v7  ;;  %v5617_v10 = vpop.f32.mrb[118].mxu0  ;;  %v5745_v11 = vpop.f32.mrb[118].mxu1 }
 0x1e4   : > { %v1780_v12 = vadd.f32 %v6307_v54, %v5617_v10  ;;  %v2292_v13 = vadd.f32 %v6307_v54, %v5745_v11  ;;  %v1771_v14 = vpop.f32.mrb[119].mxu0  ;;  %v2283_v15 = vpop.f32.mrb[119].mxu1  ;;  %v2445_v18 = vmax.f32 %v1777_v4, 0.0  ;;  %v2573_v19 = vmax.f32 %v2289_v5, 0.0 }
 0x1e5   : > { %v1772_v16 = vadd.f32 %v6307_v54, %v1771_v14  ;;  %v2284_v17 = vadd.f32 %v6307_v54, %v2283_v15  ;;  %v2443_v22 = vmax.f32 %v1769_v8, 0.0  ;;  %v2571_v23 = vmax.f32 %v2281_v9, 0.0 }
 0x1e6   : > { %v2446_v20 = vmax.f32 %v1780_v12, 0.0  ;;  %v2574_v21 = vmax.f32 %v2292_v13, 0.0 }
 0x1e7   : > { %v2444_v24 = vmax.f32 %v1772_v16, 0.0  ;;  %v2572_v25 = vmax.f32 %v2284_v17, 0.0 }
 0x1e8   : > { %v4877_v26 = vpack.c.bf16 %v2446_v20, %v2445_v18  ;;  %v5197_v27 = vpack.c.bf16 %v2574_v21, %v2573_v19 }
 0x1e9   : > { %v4872_v28 = vpack.c.bf16 %v2444_v24, %v2443_v22  ;;  %v5192_v29 = vpack.c.bf16 %v2572_v25, %v2571_v23  ;;  %v5620_v30 = vpop.f32.mrb[120].mxu0  ;;  %v5748_v31 = vpop.f32.mrb[120].mxu1 }
 0x1ea   : > { %5277 = vst [vmem:[%s6118_s13 + $0x1d8] sm:$0xff] %v4877_v26   ;;  %5341 = vst [vmem:[%s6118_s13 + $0x3d8] sm:$0xff] %v5197_v27   ;;  %v1793_v32 = vadd.f32 %v6307_v54, %v5620_v30  ;;  %v2305_v33 = vadd.f32 %v6307_v54, %v5748_v31  ;;  %v1784_v34 = vpop.f32.mrb[121].mxu0  ;;  %v2296_v35 = vpop.f32.mrb[121].mxu1 }
 0x1eb   : > { %5276 = vst [vmem:[%s6118_s13 + $0x1d0] sm:$0xff] %v4872_v28   ;;  %5340 = vst [vmem:[%s6118_s13 + $0x3d0] sm:$0xff] %v5192_v29   ;;  %v1785_v36 = vadd.f32 %v6307_v54, %v1784_v34  ;;  %v2297_v37 = vadd.f32 %v6307_v54, %v2296_v35  ;;  %v5621_v38 = vpop.f32.mrb[122].mxu0  ;;  %v5749_v39 = vpop.f32.mrb[122].mxu1 }
 0x1ec   : > { %v1796_v40 = vadd.f32 %v6307_v54, %v5621_v38  ;;  %v2308_v41 = vadd.f32 %v6307_v54, %v5749_v39  ;;  %v1787_v42 = vpop.f32.mrb[123].mxu0  ;;  %v2299_v43 = vpop.f32.mrb[123].mxu1  ;;  %v2449_v46 = vmax.f32 %v1793_v32, 0.0  ;;  %v2577_v47 = vmax.f32 %v2305_v33, 0.0 }
 0x1ed   : > { %v1788_v44 = vadd.f32 %v6307_v54, %v1787_v42  ;;  %v2300_v45 = vadd.f32 %v6307_v54, %v2299_v43  ;;  %v2447_v50 = vmax.f32 %v1785_v36, 0.0  ;;  %v2575_v51 = vmax.f32 %v2297_v37, 0.0  ;;  %v5915_v54 = vld [vmem:[%s6515_s2] ss:$0 sm:$0xff] }
 0x1ee   : > { %v2450_v48 = vmax.f32 %v1796_v40, 0.0  ;;  %v2578_v49 = vmax.f32 %v2308_v41, 0.0 }
 0x1ef   : > { %v2448_v52 = vmax.f32 %v1788_v44, 0.0  ;;  %v2576_v53 = vmax.f32 %v2300_v45, 0.0 }
 0x1f0   : > { %v4887_v55 = vpack.c.bf16 %v2450_v48, %v2449_v46  ;;  %v5207_v56 = vpack.c.bf16 %v2578_v49, %v2577_v47 }
 0x1f1   : > { %v4882_v57 = vpack.c.bf16 %v2448_v52, %v2447_v50  ;;  %v5202_v58 = vpack.c.bf16 %v2576_v53, %v2575_v51  ;;  %v5624_v59 = vpop.f32.mrb[124].mxu0  ;;  %v5752_v60 = vpop.f32.mrb[124].mxu1 }
 0x1f2   : > { %5279 = vst [vmem:[%s6118_s13 + $0x1e8] sm:$0xff] %v4887_v55   ;;  %5343 = vst [vmem:[%s6118_s13 + $0x3e8] sm:$0xff] %v5207_v56   ;;  %v1809_v61 = vadd.f32 %v5915_v54, %v5624_v59  ;;  %v2321_v62 = vadd.f32 %v5915_v54, %v5752_v60  ;;  %v1800_v63 = vpop.f32.mrb[125].mxu0  ;;  %v2312_v0 = vpop.f32.mrb[125].mxu1 }
 0x1f3   : > { %5278 = vst [vmem:[%s6118_s13 + $0x1e0] sm:$0xff] %v4882_v57   ;;  %5342 = vst [vmem:[%s6118_s13 + $0x3e0] sm:$0xff] %v5202_v58   ;;  %v1801_v1 = vadd.f32 %v5915_v54, %v1800_v63  ;;  %v2313_v2 = vadd.f32 %v5915_v54, %v2312_v0  ;;  %v5625_v3 = vpop.f32.mrb[126].mxu0  ;;  %v5753_v4 = vpop.f32.mrb[126].mxu1 }
 0x1f4   : > { %v1812_v5 = vadd.f32 %v5915_v54, %v5625_v3  ;;  %v2324_v6 = vadd.f32 %v5915_v54, %v5753_v4  ;;  %v1803_v7 = vpop.f32.mrb[127].mxu0  ;;  %v2315_v8 = vpop.f32.mrb[127].mxu1  ;;  %v2453_v11 = vmax.f32 %v1809_v61, 0.0  ;;  %v2581_v12 = vmax.f32 %v2321_v62, 0.0 }
 0x1f5   : > { %v1804_v9 = vadd.f32 %v5915_v54, %v1803_v7  ;;  %v2316_v10 = vadd.f32 %v5915_v54, %v2315_v8  ;;  %v2451_v15 = vmax.f32 %v1801_v1, 0.0  ;;  %v2579_v16 = vmax.f32 %v2313_v2, 0.0 }
 0x1f6   : > { %v2454_v13 = vmax.f32 %v1812_v5, 0.0  ;;  %v2582_v14 = vmax.f32 %v2324_v6, 0.0 }
 0x1f7   : > { %v2452_v17 = vmax.f32 %v1804_v9, 0.0  ;;  %v2580_v18 = vmax.f32 %v2316_v10, 0.0 }
 0x1f8   : > { %v4897_v19 = vpack.c.bf16 %v2454_v13, %v2453_v11  ;;  %v5217_v20 = vpack.c.bf16 %v2582_v14, %v2581_v12 }
 0x1f9   : > { %v4892_v21 = vpack.c.bf16 %v2452_v17, %v2451_v15  ;;  %v5212_v22 = vpack.c.bf16 %v2580_v18, %v2579_v16 }
 0x1fa   : > { %5281 = vst [vmem:[%s6118_s13 + $0x1f8] sm:$0xff] %v4897_v19   ;;  %5345 = vst [vmem:[%s6118_s13 + $0x3f8] sm:$0xff] %v5217_v20  }
 0x1fb   : > { %5280 = vst [vmem:[%s6118_s13 + $0x1f0] sm:$0xff] %v4892_v21   ;;  %5344 = vst [vmem:[%s6118_s13 + $0x3f0] sm:$0xff] %v5212_v22  }
 0x1fc PF: > { %s13_s12 = sadd.s32 1, %s5922_s12  }
 0x1fd   : > { %p10_p4 = scmp.ge.s32.totalorder %s13_s12, 6  }
 0x1ff   :  { %12 = sbr.rel (!%p10_p4) target bundleno = 1 (0x1), region = 62 }

</bundles_post_ra>
